<compile_context>
chip_gen: v7x
topology: tpu7x:2x2x1
jax: 0.10.0
libtpu: 0.0.40
codegen_flags: <defaults>
</compile_context>

<pallas_src>
from functools import partial
import math

import numpy as np
import jax
import jax.numpy as jnp
from jax.experimental import pallas as pl
from jax.experimental.pallas import tpu as pltpu


# ----------------------------- Pallas kernel --------------------------------

def _layernorm_f32(x, w, b, eps=1e-5):
    xf = x.astype(jnp.float32)
    mu = jnp.mean(xf, axis=-1, keepdims=True)
    var = jnp.mean((xf - mu) ** 2, axis=-1, keepdims=True)
    y = (xf - mu) * jax.lax.rsqrt(var + eps)
    return y * w + b


def residual_attention_kernel(
    n_head,
    # inputs
    x_q_ref, x_full_ref,
    ln1_w, ln1_b,
    wq, bq, wkv, bkv,
    wo, bo,
    ln2_w, ln2_b,
    wfc, bfc, wproj, bproj,
    # outputs
    out_ref,
):
    f32 = jnp.float32
    mm_dtype = wq.dtype                      # bf16 matmul operands, f32 accumulation

    xq = x_q_ref[0].astype(f32)              # (tL, E) query-row / residual tile
    xf = x_full_ref[0].astype(f32)           # (L, E)  full sequence for K/V
    tL, E = xq.shape
    L = xf.shape[0]
    H = n_head
    dh = E // H

    # ------------- attention branch: x + out_proj(MHA(LN1(x))) -------------
    xn_q = _layernorm_f32(xq, ln1_w[...], ln1_b[...])
    xn_f = _layernorm_f32(xf, ln1_w[...], ln1_b[...])

    # Q for the row tile (1/sqrt(dh) already folded into wq/bq); fused K|V for
    # the full sequence: one (E, 2E) MXU matmul instead of two.
    q = jnp.dot(xn_q.astype(mm_dtype), wq[...],
                preferred_element_type=f32) + bq[...]            # (tL, E)
    kv = jnp.dot(xn_f.astype(mm_dtype), wkv[...],
                 preferred_element_type=f32) + bkv[...]          # (L, 2E)
    k = kv[:, :E]
    v = kv[:, E:]

    # Batched-head attention — no per-head loop, no lane-dim concatenate.
    qh = q.reshape(tL, H, dh).transpose(1, 0, 2)                 # (H, tL, dh)
    kh = k.reshape(L, H, dh).transpose(1, 0, 2)                  # (H, L, dh)
    vh = v.reshape(L, H, dh).transpose(1, 0, 2)                  # (H, L, dh)

    s = jnp.einsum("hqd,hkd->hqk",
                   qh.astype(mm_dtype), kh.astype(mm_dtype),
                   preferred_element_type=f32)                   # (H, tL, L)
    s = s - jnp.max(s, axis=-1, keepdims=True)
    p = jnp.exp(s)                                               # f32 softmax math
    denom = jnp.sum(p, axis=-1, keepdims=True)                   # (H, tL, 1)
    o = jnp.einsum("hqk,hkd->hqd",
                   p.astype(mm_dtype), vh.astype(mm_dtype),
                   preferred_element_type=f32)                   # (H, tL, dh)
    o = o * pl.reciprocal(denom, approx=True)                    # deferred norm (EUP)
    attn = o.transpose(1, 0, 2).reshape(tL, E)

    attn = jnp.dot(attn.astype(mm_dtype), wo[...],
                   preferred_element_type=f32) + bo[...]
    x = xq + attn

    # ------------- MLP branch: x + c_proj(QuickGELU(c_fc(LN2(x)))) ----------
    xn2 = _layernorm_f32(x, ln2_w[...], ln2_b[...])
    hid = jnp.dot(xn2.astype(mm_dtype), wfc[...],
                  preferred_element_type=f32) + bfc[...]         # (tL, 4E)
    hid = hid * jax.nn.sigmoid(1.702 * hid)                      # QuickGELU, f32
    mlp = jnp.dot(hid.astype(mm_dtype), wproj[...],
                  preferred_element_type=f32) + bproj[...]

    out_ref[0] = (x + mlp).astype(out_ref.dtype)


# ----------------------------- wrapper ---------------------------------------

def residual_attention_block(x_lne, params, n_head, *, q_block=None,
                             mm_dtype=jnp.bfloat16):
    """x_lne: (L, N, E) float32, PyTorch MultiheadAttention (seq, batch, embed).

    q_block: query-row tile size (multiple of 8, dividing L).  q_block < L gives
    an extra parallel grid axis (feeds both v7x TensorCores even for small N).
    """
    L, N, E = x_lne.shape
    assert E % n_head == 0, "d_model must be divisible by n_head"
    if q_block is None:
        q_block = L
    assert L % q_block == 0, "q_block must divide L"
    n_q = L // q_block
    if n_q > 1:
        assert q_block % 8 == 0, "q_block must be a multiple of 8 when tiling L"

    x = jnp.transpose(x_lne, (1, 0, 2))      # (N, L, E)
    f32 = jnp.float32
    scale = 1.0 / math.sqrt(E // n_head)

    # ---- one-time weight prep (hoist to model load in production) ----------
    ipw, ipb = params["in_proj_w"], params["in_proj_b"]
    # fold attention scale into Q projection; fuse K|V weights into one matmul
    wq = (ipw[:E] * scale).T.astype(mm_dtype)                               # (E, E)
    bq = (ipb[:E] * scale).reshape(1, E).astype(f32)
    wkv = jnp.concatenate([ipw[E:2 * E].T, ipw[2 * E:].T], axis=1).astype(mm_dtype)  # (E, 2E)
    bkv = jnp.concatenate([ipb[E:2 * E], ipb[2 * E:]]).reshape(1, 2 * E).astype(f32)
    wo = params["out_proj_w"].T.astype(mm_dtype)
    bo = params["out_proj_b"].reshape(1, E).astype(f32)
    wfc = params["fc_w"].T.astype(mm_dtype)                                  # (E, 4E)
    bfc = params["fc_b"].reshape(1, 4 * E).astype(f32)
    wproj = params["proj_w"].T.astype(mm_dtype)                              # (4E, E)
    bproj = params["proj_b"].reshape(1, E).astype(f32)
    ln1_w = params["ln1_w"].reshape(1, E).astype(f32)
    ln1_b = params["ln1_b"].reshape(1, E).astype(f32)
    ln2_w = params["ln2_w"].reshape(1, E).astype(f32)
    ln2_b = params["ln2_b"].reshape(1, E).astype(f32)

    weights = (ln1_w, ln1_b, wq, bq, wkv, bkv, wo, bo,
               ln2_w, ln2_b, wfc, bfc, wproj, bproj)

    # ---- explicit VMEM budget (double-buffered inputs + f32 intermediates) --
    weight_bytes = sum(int(np.prod(w.shape)) * w.dtype.itemsize for w in weights)
    tile_bytes = (q_block + L + q_block) * E * x.dtype.itemsize
    interm_bytes = (q_block * 8 * E + n_head * q_block * L * 2) * 4
    est = 2 * (weight_bytes + tile_bytes) + interm_bytes + (4 << 20)
    # floor 32 MiB (safe everywhere), cap 48 MiB (leaves headroom on v7x's 64 MiB)
    vmem_limit = int(min(max(est, 32 << 20), 48 << 20))

    weight_specs = [pl.BlockSpec(w.shape, lambda n, qi: (0, 0)) for w in weights]

    out = pl.pallas_call(
        partial(residual_attention_kernel, n_head),
        out_shape=jax.ShapeDtypeStruct((N, L, E), x.dtype),
        grid=(N, n_q),
        in_specs=[
            pl.BlockSpec((1, q_block, E), lambda n, qi: (n, qi, 0)),   # query tile
            pl.BlockSpec((1, L, E), lambda n, qi: (n, 0, 0)),          # full seq (K/V)
        ] + weight_specs,
        out_specs=pl.BlockSpec((1, q_block, E), lambda n, qi: (n, qi, 0)),
        compiler_params=pltpu.CompilerParams(
            dimension_semantics=("parallel", "parallel"),
            vmem_limit_bytes=vmem_limit),
    )(x, x, *weights)

    return jnp.transpose(out, (1, 0, 2))     # back to (L, N, E)


# ----------------------------- pure-JAX reference ----------------------------

def reference(x_lne, p, n_head):
    L, N, E = x_lne.shape
    dh = E // n_head

    def ln(t, w, b):
        mu = t.mean(-1, keepdims=True)
        var = ((t - mu) ** 2).mean(-1, keepdims=True)
        return (t - mu) / jnp.sqrt(var + 1e-5) * w + b

    x = x_lne
    xn = ln(x, p["ln1_w"], p["ln1_b"])
    qkv = xn @ p["in_proj_w"].T + p["in_proj_b"]
    q, k, v = jnp.split(qkv, 3, axis=-1)

    def split_heads(t):
        return t.reshape(L, N, n_head, dh).transpose(1, 2, 0, 3)    # (N,H,L,dh)

    qh, kh, vh = map(split_heads, (q, k, v))
    s = jnp.einsum("nhld,nhmd->nhlm", qh, kh) / jnp.sqrt(dh)
    a = jax.nn.softmax(s, axis=-1)
    o = jnp.einsum("nhlm,nhmd->nhld", a, vh)
    o = o.transpose(2, 0, 1, 3).reshape(L, N, E)
    o = o @ p["out_proj_w"].T + p["out_proj_b"]
    x = x + o

    xn2 = ln(x, p["ln2_w"], p["ln2_b"])
    h = xn2 @ p["fc_w"].T + p["fc_b"]
    h = h * jax.nn.sigmoid(1.702 * h)
    return x + h @ p["proj_w"].T + p["proj_b"]


# ----------------------------- main -------------------------------------------

if __name__ == "__main__":
    L, N, E, n_head = 16, 2, 128, 4   # seq, batch, d_model, heads (E lane-dense)

    ks = jax.random.split(jax.random.PRNGKey(0), 11)

    params = {
        "in_proj_w":  0.02 * jax.random.normal(ks[0], (3 * E, E), jnp.float32),
        "in_proj_b":  0.02 * jax.random.normal(ks[1], (3 * E,), jnp.float32),
        "out_proj_w": 0.02 * jax.random.normal(ks[2], (E, E), jnp.float32),
        "out_proj_b": 0.02 * jax.random.normal(ks[3], (E,), jnp.float32),
        "ln1_w": jnp.ones((E,), jnp.float32) + 0.01 * jax.random.normal(ks[4], (E,), jnp.float32),
        "ln1_b": 0.01 * jax.random.normal(ks[5], (E,), jnp.float32),
        "fc_w":   0.02 * jax.random.normal(ks[6], (4 * E, E), jnp.float32),
        "fc_b":   0.02 * jax.random.normal(ks[7], (4 * E,), jnp.float32),
        "proj_w": 0.02 * jax.random.normal(ks[8], (E, 4 * E), jnp.float32),
        "proj_b": 0.02 * jax.random.normal(ks[9], (E,), jnp.float32),
        "ln2_w": jnp.ones((E,), jnp.float32),
        "ln2_b": jnp.zeros((E,), jnp.float32),
    }

    x = jax.random.normal(ks[10], (L, N, E), jnp.float32)

    # q_block < L exercises the extra parallel grid axis (v7x dual-TensorCore path).
    y = residual_attention_block(x, params, n_head, q_block=8)
    y = jax.block_until_ready(y)

    y_ref = reference(x, params, n_head)
    # bf16 matmul operands with f32 accumulation -> relaxed tolerance vs f32 ref.
    np.testing.assert_allclose(np.asarray(y), np.asarray(y_ref), rtol=2e-2, atol=2e-2)

    print("KERNEL_OK")
</pallas_src>

<mosaic_0001>
module attributes {stable_mosaic.version = 11 : i64} {
  func.func @residual_attention_kernel(%arg0: i32, %arg1: i32, %arg2: memref<1x8x128xf32, #tpu.memory_space<vmem>>, %arg3: memref<1x16x128xf32, #tpu.memory_space<vmem>>, %arg4: memref<1x128xf32, #tpu.memory_space<vmem>>, %arg5: memref<1x128xf32, #tpu.memory_space<vmem>>, %arg6: memref<128x128xbf16, #tpu.memory_space<vmem>>, %arg7: memref<1x128xf32, #tpu.memory_space<vmem>>, %arg8: memref<128x256xbf16, #tpu.memory_space<vmem>>, %arg9: memref<1x256xf32, #tpu.memory_space<vmem>>, %arg10: memref<128x128xbf16, #tpu.memory_space<vmem>>, %arg11: memref<1x128xf32, #tpu.memory_space<vmem>>, %arg12: memref<1x128xf32, #tpu.memory_space<vmem>>, %arg13: memref<1x128xf32, #tpu.memory_space<vmem>>, %arg14: memref<128x512xbf16, #tpu.memory_space<vmem>>, %arg15: memref<1x512xf32, #tpu.memory_space<vmem>>, %arg16: memref<512x128xbf16, #tpu.memory_space<vmem>>, %arg17: memref<1x128xf32, #tpu.memory_space<vmem>>, %arg18: memref<1x8x128xf32, #tpu.memory_space<vmem>>) attributes {dimension_semantics = [#tpu.dimension_semantics<parallel>, #tpu.dimension_semantics<parallel>], iteration_bounds = array<i64: 2, 2>, scalar_prefetch = 0 : i64, scratch_operands = 0 : i64, tpu.core_type = #tpu.core_type<tc>, window_params = [{transform_indices = @transform_0, window_bounds = array<i64: 1, 8, 128>}, {transform_indices = @transform_1, window_bounds = array<i64: 1, 16, 128>}, {pipeline_mode = #tpu.pipeline_mode<synchronous>, transform_indices = @transform_2, window_bounds = array<i64: 1, 128>}, {pipeline_mode = #tpu.pipeline_mode<synchronous>, transform_indices = @transform_3, window_bounds = array<i64: 1, 128>}, {pipeline_mode = #tpu.pipeline_mode<synchronous>, transform_indices = @transform_4, window_bounds = array<i64: 128, 128>}, {pipeline_mode = #tpu.pipeline_mode<synchronous>, transform_indices = @transform_5, window_bounds = array<i64: 1, 128>}, {pipeline_mode = #tpu.pipeline_mode<synchronous>, transform_indices = @transform_6, window_bounds = array<i64: 128, 256>}, {pipeline_mode = #tpu.pipeline_mode<synchronous>, transform_indices = @transform_7, window_bounds = array<i64: 1, 256>}, {pipeline_mode = #tpu.pipeline_mode<synchronous>, transform_indices = @transform_8, window_bounds = array<i64: 128, 128>}, {pipeline_mode = #tpu.pipeline_mode<synchronous>, transform_indices = @transform_9, window_bounds = array<i64: 1, 128>}, {pipeline_mode = #tpu.pipeline_mode<synchronous>, transform_indices = @transform_10, window_bounds = array<i64: 1, 128>}, {pipeline_mode = #tpu.pipeline_mode<synchronous>, transform_indices = @transform_11, window_bounds = array<i64: 1, 128>}, {pipeline_mode = #tpu.pipeline_mode<synchronous>, transform_indices = @transform_12, window_bounds = array<i64: 128, 512>}, {pipeline_mode = #tpu.pipeline_mode<synchronous>, transform_indices = @transform_13, window_bounds = array<i64: 1, 512>}, {pipeline_mode = #tpu.pipeline_mode<synchronous>, transform_indices = @transform_14, window_bounds = array<i64: 512, 128>}, {pipeline_mode = #tpu.pipeline_mode<synchronous>, transform_indices = @transform_15, window_bounds = array<i64: 1, 128>}, {transform_indices = @transform_16, window_bounds = array<i64: 1, 8, 128>}]} {
    %c0 = arith.constant 0 : index
    %c0_0 = arith.constant 0 : index
    %c0_1 = arith.constant 0 : index
    %0 = vector.load %arg2[%c0, %c0_0, %c0_1] : memref<1x8x128xf32, #tpu.memory_space<vmem>>, vector<1x8x128xf32>
    %1 = vector.shape_cast %0 : vector<1x8x128xf32> to vector<8x128xf32>
    %c0_2 = arith.constant 0 : index
    %c0_3 = arith.constant 0 : index
    %c0_4 = arith.constant 0 : index
    %2 = vector.load %arg3[%c0_2, %c0_3, %c0_4] : memref<1x16x128xf32, #tpu.memory_space<vmem>>, vector<1x16x128xf32>
    %3 = vector.shape_cast %2 : vector<1x16x128xf32> to vector<16x128xf32>
    %c0_5 = arith.constant 0 : index
    %c0_6 = arith.constant 0 : index
    %4 = vector.load %arg4[%c0_5, %c0_6] : memref<1x128xf32, #tpu.memory_space<vmem>>, vector<1x128xf32>
    %c0_7 = arith.constant 0 : index
    %c0_8 = arith.constant 0 : index
    %5 = vector.load %arg5[%c0_7, %c0_8] : memref<1x128xf32, #tpu.memory_space<vmem>>, vector<1x128xf32>
    %cst = arith.constant dense<0.000000e+00> : vector<8xf32>
    %6 = vector.multi_reduction <add>, %1, %cst [1] : vector<8x128xf32> to vector<8xf32>
    %7 = vector.shape_cast %6 : vector<8xf32> to vector<8x1xf32>
    %cst_9 = arith.constant 1.280000e+02 : f32
    %8 = vector.broadcast %cst_9 : f32 to vector<8x1xf32>
    %9 = arith.divf %7, %8 : vector<8x1xf32>
    %10 = vector.broadcast %9 : vector<8x1xf32> to vector<8x128xf32>
    %11 = arith.subf %1, %10 : vector<8x128xf32>
    %12 = arith.mulf %11, %11 : vector<8x128xf32>
    %cst_10 = arith.constant dense<0.000000e+00> : vector<8xf32>
    %13 = vector.multi_reduction <add>, %12, %cst_10 [1] : vector<8x128xf32> to vector<8xf32>
    %14 = vector.shape_cast %13 : vector<8xf32> to vector<8x1xf32>
    %cst_11 = arith.constant 1.280000e+02 : f32
    %15 = vector.broadcast %cst_11 : f32 to vector<8x1xf32>
    %16 = arith.divf %14, %15 : vector<8x1xf32>
    %17 = vector.broadcast %9 : vector<8x1xf32> to vector<8x128xf32>
    %18 = arith.subf %1, %17 : vector<8x128xf32>
    %cst_12 = arith.constant 9.99999974E-6 : f32
    %19 = vector.broadcast %cst_12 : f32 to vector<8x1xf32>
    %20 = arith.addf %16, %19 : vector<8x1xf32>
    %21 = math.rsqrt %20 : vector<8x1xf32>
    %22 = vector.broadcast %21 : vector<8x1xf32> to vector<8x128xf32>
    %23 = arith.mulf %18, %22 : vector<8x128xf32>
    %24 = vector.broadcast %4 : vector<1x128xf32> to vector<8x128xf32>
    %25 = arith.mulf %23, %24 : vector<8x128xf32>
    %26 = vector.broadcast %5 : vector<1x128xf32> to vector<8x128xf32>
    %27 = arith.addf %25, %26 : vector<8x128xf32>
    %c0_13 = arith.constant 0 : index
    %c0_14 = arith.constant 0 : index
    %28 = vector.load %arg4[%c0_13, %c0_14] : memref<1x128xf32, #tpu.memory_space<vmem>>, vector<1x128xf32>
    %c0_15 = arith.constant 0 : index
    %c0_16 = arith.constant 0 : index
    %29 = vector.load %arg5[%c0_15, %c0_16] : memref<1x128xf32, #tpu.memory_space<vmem>>, vector<1x128xf32>
    %cst_17 = arith.constant dense<0.000000e+00> : vector<16xf32>
    %30 = vector.multi_reduction <add>, %3, %cst_17 [1] : vector<16x128xf32> to vector<16xf32>
    %31 = vector.shape_cast %30 : vector<16xf32> to vector<16x1xf32>
    %cst_18 = arith.constant 1.280000e+02 : f32
    %32 = vector.broadcast %cst_18 : f32 to vector<16x1xf32>
    %33 = arith.divf %31, %32 : vector<16x1xf32>
    %34 = vector.broadcast %33 : vector<16x1xf32> to vector<16x128xf32>
    %35 = arith.subf %3, %34 : vector<16x128xf32>
    %36 = arith.mulf %35, %35 : vector<16x128xf32>
    %cst_19 = arith.constant dense<0.000000e+00> : vector<16xf32>
    %37 = vector.multi_reduction <add>, %36, %cst_19 [1] : vector<16x128xf32> to vector<16xf32>
    %38 = vector.shape_cast %37 : vector<16xf32> to vector<16x1xf32>
    %cst_20 = arith.constant 1.280000e+02 : f32
    %39 = vector.broadcast %cst_20 : f32 to vector<16x1xf32>
    %40 = arith.divf %38, %39 : vector<16x1xf32>
    %41 = vector.broadcast %33 : vector<16x1xf32> to vector<16x128xf32>
    %42 = arith.subf %3, %41 : vector<16x128xf32>
    %cst_21 = arith.constant 9.99999974E-6 : f32
    %43 = vector.broadcast %cst_21 : f32 to vector<16x1xf32>
    %44 = arith.addf %40, %43 : vector<16x1xf32>
    %45 = math.rsqrt %44 : vector<16x1xf32>
    %46 = vector.broadcast %45 : vector<16x1xf32> to vector<16x128xf32>
    %47 = arith.mulf %42, %46 : vector<16x128xf32>
    %48 = vector.broadcast %28 : vector<1x128xf32> to vector<16x128xf32>
    %49 = arith.mulf %47, %48 : vector<16x128xf32>
    %50 = vector.broadcast %29 : vector<1x128xf32> to vector<16x128xf32>
    %51 = arith.addf %49, %50 : vector<16x128xf32>
    %52 = arith.truncf %27 : vector<8x128xf32> to vector<8x128xbf16>
    %c0_22 = arith.constant 0 : index
    %c0_23 = arith.constant 0 : index
    %53 = vector.load %arg6[%c0_22, %c0_23] : memref<128x128xbf16, #tpu.memory_space<vmem>>, vector<128x128xbf16>
    %cst_24 = arith.constant dense<0.000000e+00> : vector<8x128xf32>
    %54 = tpu.matmul %52, %53, %cst_24 {dimension_numbers = #tpu.dot_dimension_numbers<[1], [0], [0], [1], [0, 0, 1, 1], [], []>} : vector<8x128xbf16>, vector<128x128xbf16>, vector<8x128xf32> -> vector<8x128xf32>
    %c0_25 = arith.constant 0 : index
    %c0_26 = arith.constant 0 : index
    %55 = vector.load %arg7[%c0_25, %c0_26] : memref<1x128xf32, #tpu.memory_space<vmem>>, vector<1x128xf32>
    %56 = vector.broadcast %55 : vector<1x128xf32> to vector<8x128xf32>
    %57 = arith.addf %54, %56 : vector<8x128xf32>
    %58 = arith.truncf %51 : vector<16x128xf32> to vector<16x128xbf16>
    %c0_27 = arith.constant 0 : index
    %c0_28 = arith.constant 0 : index
    %59 = vector.load %arg8[%c0_27, %c0_28] : memref<128x256xbf16, #tpu.memory_space<vmem>>, vector<128x256xbf16>
    %cst_29 = arith.constant dense<0.000000e+00> : vector<16x256xf32>
    %60 = tpu.matmul %58, %59, %cst_29 {dimension_numbers = #tpu.dot_dimension_numbers<[1], [0], [0], [1], [0, 0, 1, 1], [], []>} : vector<16x128xbf16>, vector<128x256xbf16>, vector<16x256xf32> -> vector<16x256xf32>
    %c0_30 = arith.constant 0 : index
    %c0_31 = arith.constant 0 : index
    %61 = vector.load %arg9[%c0_30, %c0_31] : memref<1x256xf32, #tpu.memory_space<vmem>>, vector<1x256xf32>
    %62 = vector.broadcast %61 : vector<1x256xf32> to vector<16x256xf32>
    %63 = arith.addf %60, %62 : vector<16x256xf32>
    %64 = vector.extract_strided_slice %63 {offsets = [0, 0], sizes = [16, 128], strides = [1, 1]} : vector<16x256xf32> to vector<16x128xf32>
    %65 = vector.extract_strided_slice %63 {offsets = [0, 128], sizes = [16, 128], strides = [1, 1]} : vector<16x256xf32> to vector<16x128xf32>
    %66 = vector.shape_cast %57 : vector<8x128xf32> to vector<8x4x32xf32>
    %67 = tpu.transpose %66, [1, 0, 2] : vector<8x4x32xf32> -> vector<4x8x32xf32>
    %68 = vector.shape_cast %64 : vector<16x128xf32> to vector<16x4x32xf32>
    %69 = tpu.transpose %68, [1, 0, 2] : vector<16x4x32xf32> -> vector<4x16x32xf32>
    %70 = vector.shape_cast %65 : vector<16x128xf32> to vector<16x4x32xf32>
    %71 = tpu.transpose %70, [1, 0, 2] : vector<16x4x32xf32> -> vector<4x16x32xf32>
    %72 = arith.truncf %67 : vector<4x8x32xf32> to vector<4x8x32xbf16>
    %73 = arith.truncf %69 : vector<4x16x32xf32> to vector<4x16x32xbf16>
    "tpu.trace_start"() <{level = 10 : i32, message = "hqd,hkd->hqk"}> : () -> ()
    %cst_32 = arith.constant dense<0.000000e+00> : vector<4x8x16xf32>
    %74 = tpu.matmul %72, %73, %cst_32 {dimension_numbers = #tpu.dot_dimension_numbers<[2], [2], [1], [1], [0, 0, 0, 1, 1, 1], [0], [0]>} : vector<4x8x32xbf16>, vector<4x16x32xbf16>, vector<4x8x16xf32> -> vector<4x8x16xf32>
    "tpu.trace_stop"() : () -> ()
    %cst_33 = arith.constant dense<0xFF800000> : vector<4x8xf32>
    %75 = vector.multi_reduction <maximumf>, %74, %cst_33 [2] : vector<4x8x16xf32> to vector<4x8xf32>
    %76 = vector.shape_cast %75 : vector<4x8xf32> to vector<4x8x1xf32>
    %77 = vector.broadcast %76 : vector<4x8x1xf32> to vector<4x8x16xf32>
    %78 = arith.subf %74, %77 : vector<4x8x16xf32>
    %79 = math.exp %78 : vector<4x8x16xf32>
    %cst_34 = arith.constant dense<0.000000e+00> : vector<4x8xf32>
    %80 = vector.multi_reduction <add>, %79, %cst_34 [2] : vector<4x8x16xf32> to vector<4x8xf32>
    %81 = vector.shape_cast %80 : vector<4x8xf32> to vector<4x8x1xf32>
    %82 = arith.truncf %79 : vector<4x8x16xf32> to vector<4x8x16xbf16>
    %83 = arith.truncf %71 : vector<4x16x32xf32> to vector<4x16x32xbf16>
    "tpu.trace_start"() <{level = 10 : i32, message = "hqk,hkd->hqd"}> : () -> ()
    %cst_35 = arith.constant dense<0.000000e+00> : vector<4x8x32xf32>
    %84 = tpu.matmul %82, %83, %cst_35 {dimension_numbers = #tpu.dot_dimension_numbers<[2], [1], [1], [2], [0, 0, 0, 1, 1, 2], [0], [0]>} : vector<4x8x16xbf16>, vector<4x16x32xbf16>, vector<4x8x32xf32> -> vector<4x8x32xf32>
    "tpu.trace_stop"() : () -> ()
    %85 = tpu.reciprocal %81 {approx = true} : vector<4x8x1xf32> -> vector<4x8x1xf32>
    %86 = vector.broadcast %85 : vector<4x8x1xf32> to vector<4x8x32xf32>
    %87 = arith.mulf %84, %86 : vector<4x8x32xf32>
    %88 = tpu.transpose %87, [1, 0, 2] : vector<4x8x32xf32> -> vector<8x4x32xf32>
    %89 = vector.shape_cast %88 : vector<8x4x32xf32> to vector<8x128xf32>
    %90 = arith.truncf %89 : vector<8x128xf32> to vector<8x128xbf16>
    %c0_36 = arith.constant 0 : index
    %c0_37 = arith.constant 0 : index
    %91 = vector.load %arg10[%c0_36, %c0_37] : memref<128x128xbf16, #tpu.memory_space<vmem>>, vector<128x128xbf16>
    %cst_38 = arith.constant dense<0.000000e+00> : vector<8x128xf32>
    %92 = tpu.matmul %90, %91, %cst_38 {dimension_numbers = #tpu.dot_dimension_numbers<[1], [0], [0], [1], [0, 0, 1, 1], [], []>} : vector<8x128xbf16>, vector<128x128xbf16>, vector<8x128xf32> -> vector<8x128xf32>
    %c0_39 = arith.constant 0 : index
    %c0_40 = arith.constant 0 : index
    %93 = vector.load %arg11[%c0_39, %c0_40] : memref<1x128xf32, #tpu.memory_space<vmem>>, vector<1x128xf32>
    %94 = vector.broadcast %93 : vector<1x128xf32> to vector<8x128xf32>
    %95 = arith.addf %92, %94 : vector<8x128xf32>
    %96 = arith.addf %1, %95 : vector<8x128xf32>
    %c0_41 = arith.constant 0 : index
    %c0_42 = arith.constant 0 : index
    %97 = vector.load %arg12[%c0_41, %c0_42] : memref<1x128xf32, #tpu.memory_space<vmem>>, vector<1x128xf32>
    %c0_43 = arith.constant 0 : index
    %c0_44 = arith.constant 0 : index
    %98 = vector.load %arg13[%c0_43, %c0_44] : memref<1x128xf32, #tpu.memory_space<vmem>>, vector<1x128xf32>
    %cst_45 = arith.constant dense<0.000000e+00> : vector<8xf32>
    %99 = vector.multi_reduction <add>, %96, %cst_45 [1] : vector<8x128xf32> to vector<8xf32>
    %100 = vector.shape_cast %99 : vector<8xf32> to vector<8x1xf32>
    %cst_46 = arith.constant 1.280000e+02 : f32
    %101 = vector.broadcast %cst_46 : f32 to vector<8x1xf32>
    %102 = arith.divf %100, %101 : vector<8x1xf32>
    %103 = vector.broadcast %102 : vector<8x1xf32> to vector<8x128xf32>
    %104 = arith.subf %96, %103 : vector<8x128xf32>
    %105 = arith.mulf %104, %104 : vector<8x128xf32>
    %cst_47 = arith.constant dense<0.000000e+00> : vector<8xf32>
    %106 = vector.multi_reduction <add>, %105, %cst_47 [1] : vector<8x128xf32> to vector<8xf32>
    %107 = vector.shape_cast %106 : vector<8xf32> to vector<8x1xf32>
    %cst_48 = arith.constant 1.280000e+02 : f32
    %108 = vector.broadcast %cst_48 : f32 to vector<8x1xf32>
    %109 = arith.divf %107, %108 : vector<8x1xf32>
    %110 = vector.broadcast %102 : vector<8x1xf32> to vector<8x128xf32>
    %111 = arith.subf %96, %110 : vector<8x128xf32>
    %cst_49 = arith.constant 9.99999974E-6 : f32
    %112 = vector.broadcast %cst_49 : f32 to vector<8x1xf32>
    %113 = arith.addf %109, %112 : vector<8x1xf32>
    %114 = math.rsqrt %113 : vector<8x1xf32>
    %115 = vector.broadcast %114 : vector<8x1xf32> to vector<8x128xf32>
    %116 = arith.mulf %111, %115 : vector<8x128xf32>
    %117 = vector.broadcast %97 : vector<1x128xf32> to vector<8x128xf32>
    %118 = arith.mulf %116, %117 : vector<8x128xf32>
    %119 = vector.broadcast %98 : vector<1x128xf32> to vector<8x128xf32>
    %120 = arith.addf %118, %119 : vector<8x128xf32>
    %121 = arith.truncf %120 : vector<8x128xf32> to vector<8x128xbf16>
    %c0_50 = arith.constant 0 : index
    %c0_51 = arith.constant 0 : index
    %122 = vector.load %arg14[%c0_50, %c0_51] : memref<128x512xbf16, #tpu.memory_space<vmem>>, vector<128x512xbf16>
    %cst_52 = arith.constant dense<0.000000e+00> : vector<8x512xf32>
    %123 = tpu.matmul %121, %122, %cst_52 {dimension_numbers = #tpu.dot_dimension_numbers<[1], [0], [0], [1], [0, 0, 1, 1], [], []>} : vector<8x128xbf16>, vector<128x512xbf16>, vector<8x512xf32> -> vector<8x512xf32>
    %c0_53 = arith.constant 0 : index
    %c0_54 = arith.constant 0 : index
    %124 = vector.load %arg15[%c0_53, %c0_54] : memref<1x512xf32, #tpu.memory_space<vmem>>, vector<1x512xf32>
    %125 = vector.broadcast %124 : vector<1x512xf32> to vector<8x512xf32>
    %126 = arith.addf %123, %125 : vector<8x512xf32>
    %cst_55 = arith.constant 1.702000e+00 : f32
    %127 = vector.broadcast %cst_55 : f32 to vector<8x512xf32>
    %128 = arith.mulf %127, %126 : vector<8x512xf32>
    %129 = arith.negf %128 : vector<8x512xf32>
    %130 = math.exp %129 : vector<8x512xf32>
    %cst_56 = arith.constant 1.000000e+00 : f32
    %131 = vector.broadcast %cst_56 : f32 to vector<8x512xf32>
    %132 = arith.addf %131, %130 : vector<8x512xf32>
    %133 = arith.divf %131, %132 : vector<8x512xf32>
    %134 = arith.mulf %126, %133 : vector<8x512xf32>
    %135 = arith.truncf %134 : vector<8x512xf32> to vector<8x512xbf16>
    %c0_57 = arith.constant 0 : index
    %c0_58 = arith.constant 0 : index
    %136 = vector.load %arg16[%c0_57, %c0_58] : memref<512x128xbf16, #tpu.memory_space<vmem>>, vector<512x128xbf16>
    %cst_59 = arith.constant dense<0.000000e+00> : vector<8x128xf32>
    %137 = tpu.matmul %135, %136, %cst_59 {dimension_numbers = #tpu.dot_dimension_numbers<[1], [0], [0], [1], [0, 0, 1, 1], [], []>} : vector<8x512xbf16>, vector<512x128xbf16>, vector<8x128xf32> -> vector<8x128xf32>
    %c0_60 = arith.constant 0 : index
    %c0_61 = arith.constant 0 : index
    %138 = vector.load %arg17[%c0_60, %c0_61] : memref<1x128xf32, #tpu.memory_space<vmem>>, vector<1x128xf32>
    %139 = vector.broadcast %138 : vector<1x128xf32> to vector<8x128xf32>
    %140 = arith.addf %137, %139 : vector<8x128xf32>
    %141 = arith.addf %96, %140 : vector<8x128xf32>
    %c0_62 = arith.constant 0 : index
    %c0_63 = arith.constant 0 : index
    %c0_64 = arith.constant 0 : index
    %142 = vector.load %arg18[%c0_62, %c0_63, %c0_64] : memref<1x8x128xf32, #tpu.memory_space<vmem>>, vector<1x8x128xf32>
    %143 = vector.shape_cast %142 : vector<1x8x128xf32> to vector<8x128xf32>
    %144 = vector.shape_cast %141 : vector<8x128xf32> to vector<1x8x128xf32>
    tpu.vector_store %arg18[%c0_62, %c0_63, %c0_64], %144 {strides = array<i32>} : memref<1x8x128xf32, #tpu.memory_space<vmem>>, vector<1x8x128xf32>,
    return
  }
  func.func @transform_0(%arg0: i32, %arg1: i32) -> (i32, i32, i32) {
    %c0_i32 = arith.constant 0 : i32
    %c0_i32_0 = arith.constant 0 : i32
    return %arg0, %arg1, %c0_i32 : i32, i32, i32
  }
  func.func @transform_1(%arg0: i32, %arg1: i32) -> (i32, i32, i32) {
    %c0_i32 = arith.constant 0 : i32
    %c0_i32_0 = arith.constant 0 : i32
    %c0_i32_1 = arith.constant 0 : i32
    return %arg0, %c0_i32, %c0_i32_0 : i32, i32, i32
  }
  func.func @transform_2(%arg0: i32, %arg1: i32) -> (i32, i32) {
    %c0_i32 = arith.constant 0 : i32
    %c0_i32_0 = arith.constant 0 : i32
    %c0_i32_1 = arith.constant 0 : i32
    return %c0_i32, %c0_i32_0 : i32, i32
  }
  func.func @transform_3(%arg0: i32, %arg1: i32) -> (i32, i32) {
    %c0_i32 = arith.constant 0 : i32
    %c0_i32_0 = arith.constant 0 : i32
    %c0_i32_1 = arith.constant 0 : i32
    return %c0_i32, %c0_i32_0 : i32, i32
  }
  func.func @transform_4(%arg0: i32, %arg1: i32) -> (i32, i32) {
    %c0_i32 = arith.constant 0 : i32
    %c0_i32_0 = arith.constant 0 : i32
    %c0_i32_1 = arith.constant 0 : i32
    return %c0_i32, %c0_i32_0 : i32, i32
  }
  func.func @transform_5(%arg0: i32, %arg1: i32) -> (i32, i32) {
    %c0_i32 = arith.constant 0 : i32
    %c0_i32_0 = arith.constant 0 : i32
    %c0_i32_1 = arith.constant 0 : i32
    return %c0_i32, %c0_i32_0 : i32, i32
  }
  func.func @transform_6(%arg0: i32, %arg1: i32) -> (i32, i32) {
    %c0_i32 = arith.constant 0 : i32
    %c0_i32_0 = arith.constant 0 : i32
    %c0_i32_1 = arith.constant 0 : i32
    return %c0_i32, %c0_i32_0 : i32, i32
  }
  func.func @transform_7(%arg0: i32, %arg1: i32) -> (i32, i32) {
    %c0_i32 = arith.constant 0 : i32
    %c0_i32_0 = arith.constant 0 : i32
    %c0_i32_1 = arith.constant 0 : i32
    return %c0_i32, %c0_i32_0 : i32, i32
  }
  func.func @transform_8(%arg0: i32, %arg1: i32) -> (i32, i32) {
    %c0_i32 = arith.constant 0 : i32
    %c0_i32_0 = arith.constant 0 : i32
    %c0_i32_1 = arith.constant 0 : i32
    return %c0_i32, %c0_i32_0 : i32, i32
  }
  func.func @transform_9(%arg0: i32, %arg1: i32) -> (i32, i32) {
    %c0_i32 = arith.constant 0 : i32
    %c0_i32_0 = arith.constant 0 : i32
    %c0_i32_1 = arith.constant 0 : i32
    return %c0_i32, %c0_i32_0 : i32, i32
  }
  func.func @transform_10(%arg0: i32, %arg1: i32) -> (i32, i32) {
    %c0_i32 = arith.constant 0 : i32
    %c0_i32_0 = arith.constant 0 : i32
    %c0_i32_1 = arith.constant 0 : i32
    return %c0_i32, %c0_i32_0 : i32, i32
  }
  func.func @transform_11(%arg0: i32, %arg1: i32) -> (i32, i32) {
    %c0_i32 = arith.constant 0 : i32
    %c0_i32_0 = arith.constant 0 : i32
    %c0_i32_1 = arith.constant 0 : i32
    return %c0_i32, %c0_i32_0 : i32, i32
  }
  func.func @transform_12(%arg0: i32, %arg1: i32) -> (i32, i32) {
    %c0_i32 = arith.constant 0 : i32
    %c0_i32_0 = arith.constant 0 : i32
    %c0_i32_1 = arith.constant 0 : i32
    return %c0_i32, %c0_i32_0 : i32, i32
  }
  func.func @transform_13(%arg0: i32, %arg1: i32) -> (i32, i32) {
    %c0_i32 = arith.constant 0 : i32
    %c0_i32_0 = arith.constant 0 : i32
    %c0_i32_1 = arith.constant 0 : i32
    return %c0_i32, %c0_i32_0 : i32, i32
  }
  func.func @transform_14(%arg0: i32, %arg1: i32) -> (i32, i32) {
    %c0_i32 = arith.constant 0 : i32
    %c0_i32_0 = arith.constant 0 : i32
    %c0_i32_1 = arith.constant 0 : i32
    return %c0_i32, %c0_i32_0 : i32, i32
  }
  func.func @transform_15(%arg0: i32, %arg1: i32) -> (i32, i32) {
    %c0_i32 = arith.constant 0 : i32
    %c0_i32_0 = arith.constant 0 : i32
    %c0_i32_1 = arith.constant 0 : i32
    return %c0_i32, %c0_i32_0 : i32, i32
  }
  func.func @transform_16(%arg0: i32, %arg1: i32) -> (i32, i32, i32) {
    %c0_i32 = arith.constant 0 : i32
    %c0_i32_0 = arith.constant 0 : i32
    return %arg0, %arg1, %c0_i32 : i32, i32, i32
  }
}

</mosaic_0001>

<bundles_post_ra>
// kernel: tpu_custom_call.1
= control target key start
LH: loop header
LB: loop body
LE: loop exit
PB: predicated region body
PF: predicated region fallthrough
CT: control target
= control target key end

     0   :  { %s5139_s0 = inlined_call_operand.hbm [shape: f32[2,16,128], index: 0, kind: input, shape index: {}]   ;;  %s5140_s1 = inlined_call_operand.hbm [shape: f32[2,16,128], index: 1, kind: input, shape index: {}]   ;;  %s5141_s2 = inlined_call_operand.vmem [shape: f32[1,128], index: 2, kind: input, shape index: {}]   ;;  %s5142_s3 = inlined_call_operand.vmem [shape: f32[1,128], index: 3, kind: input, shape index: {}]   ;;  %s5143_s4 = inlined_call_operand.hbm [shape: bf16[128,128], index: 4, kind: input, shape index: {}]   ;;  %s5144_s5 = inlined_call_operand.vmem [shape: f32[1,128], index: 5, kind: input, shape index: {}]   ;;  %s5145_s6 = inlined_call_operand.hbm [shape: bf16[128,256], index: 6, kind: input, shape index: {}]   ;;  %s5146_s7 = inlined_call_operand.vmem [shape: f32[1,256], index: 7, kind: input, shape index: {}]   ;;  %s5147_s8 = inlined_call_operand.hbm [shape: bf16[128,128], index: 8, kind: input, shape index: {}]   ;;  %s5148_s9 = inlined_call_operand.vmem [shape: f32[1,128], index: 9, kind: input, shape index: {}]   ;;  %s5149_s10 = inlined_call_operand.vmem [shape: f32[1,128], index: 10, kind: input, shape index: {}]   ;;  %s5150_s11 = inlined_call_operand.vmem [shape: f32[1,128], index: 11, kind: input, shape index: {}]   ;;  %s5151_s12 = inlined_call_operand.hbm [shape: bf16[128,512], index: 12, kind: input, shape index: {}]   ;;  %s5152_s13 = inlined_call_operand.vmem [shape: f32[1,512], index: 13, kind: input, shape index: {}]   ;;  %s5153_s14 = inlined_call_operand.hbm [shape: bf16[512,128], index: 14, kind: input, shape index: {}]   ;;  %s5154_s15 = inlined_call_operand.vmem [shape: f32[1,128], index: 15, kind: input, shape index: {}]   ;;  %s5155_s16 = inlined_call_operand.hbm [shape: f32[2,16,128], index: 16, kind: output, shape index: {}]  }
   0x1   :  { %5173 = sst [smem:[#allocation25_spill]] %s5139_s0 }
   0x2   :  { %5174 = sst [smem:[#allocation26_spill]] %s5140_s1 }
   0x3   :  { %5175 = sst [smem:[#allocation27_spill]] %s5141_s2 }
   0x4   :  { %5176 = sst [smem:[#allocation28_spill]] %s5142_s3 }
   0x5   :  { %5177 = sst [smem:[#allocation29_spill]] %s5143_s4 }
   0x6   :  { %5178 = sst [smem:[#allocation30_spill]] %s5144_s5 }
   0x7   :  { %5179 = sst [smem:[#allocation31_spill]] %s5145_s6 }
   0x8   :  { %5180 = sst [smem:[#allocation32_spill]] %s5146_s7 }
   0x9   :  { %5181 = sst [smem:[#allocation33_spill]] %s5147_s8 }
   0xa   :  { %5182 = sst [smem:[#allocation34_spill]] %s5148_s9 }
   0xb   :  { %5183 = sst [smem:[#allocation35_spill]] %s5149_s10 }
   0xc   :  { %5184 = sst [smem:[#allocation36_spill]] %s5150_s11 }
   0xd   :  { %5185 = sst [smem:[#allocation37_spill]] %s5151_s12 }
   0xe   :  { %5186 = sst [smem:[#allocation38_spill]] %s5152_s13 }
   0xf   :  { %5187 = sst [smem:[#allocation39_spill]] %s5153_s14 }
  0x10   :  { %5188 = sst [smem:[#allocation40_spill]] %s5154_s15 }
  0x11   :  { %5189 = sst [smem:[#allocation41_spill]] %s5155_s16 }
  0x12   :  { %21 = vsyncpa [#allocation3], 0 }
  0x13   :  { %23 = vsyncpa [#allocation3 + $0x1], 0 }
  0x14   :  { %24 = vsyncpa [#allocation6], 0 }
  0x15   :  { %26 = vsyncpa [#allocation6 + $0x1], 0 }
  0x16   :  { %27 = vsyncpa [#allocation9], 0 }
  0x17   :  { %28 = vsyncpa [#allocation12], 0 }
  0x18   :  { %29 = vsyncpa [#allocation4], 0 }
  0x19   :  { %31 = vsyncpa [#allocation4 + $0x1], 0  ;;  %s4382_s21 = smov 0   ;;  %s4384_s22 = smov 0  }
  0x1a   :  { %s4386_s23 = smov 0   ;;  %s4388_s24 = smov 0  }
  0x1b   :  { %s4390_s25 = smov 0   ;;  %s4392_s26 = smov 0  }
  0x1c   :  { %s4394_s27 = smov 0   ;;  %s4396_s28 = smov 0  }
  0x1d   :  { %s4398_s29 = smov 0   ;;  %s4400_s30 = smov 0  }
  0x1e   :  { %s4402_s0 = smov 0  }
  0x1f LB: > { %5190 = sst [smem:[#allocation21_spill]] %s4257_s27  ;;  %s4438_s17 = sadd.s32 4294967295, %s4273_s0   ;;  %s4273_s0 = sphi %s4402_s0, %s37_s0   ;;  %s4269_s30 = sphi %s4400_s30, %s5253_s30   ;;  %s4265_s29 = sphi %s4398_s29, %s5252_s29   ;;  %s4261_s28 = sphi %s4396_s28, %s5251_s28   ;;  %s4257_s27 = sphi %s4394_s27, %s5250_s27   ;;  %s4253_s26 = sphi %s4392_s26, %s5249_s26   ;;  %s4249_s25 = sphi %s4390_s25, %s5248_s25   ;;  %s4245_s24 = sphi %s4388_s24, %s5247_s24   ;;  %s4241_s23 = sphi %s4386_s23, %s5246_s23   ;;  %s4237_s22 = sphi %s4384_s22, %s5245_s22   ;;  %s4233_s21 = sphi %s4382_s21, %s5244_s21  }
  0x20   : > { %5191 = sst [smem:[#allocation22_spill]] %s4261_s28  ;;  %p3281_p0 = scmp.ge.s32.totalorder %s4273_s0, 1 }
  0x21   : > { %p5158_p1 = scmp.eq.s32.totalorder %s4438_s17, 0  ;;  %p430_p2 = scmp.lt.s32.totalorder %s4273_s0, 5 }
  0x22   : > { %s4275_s19 = smov [#allocation7]   ;;  %s4276_s15 = smov [#allocation8]  }
  0x23   : > { %p4443_p3 = pnand %p3281_p0, %p430_p2  ;;  %s448_s20 = sshll.u32 %s4275_s19, 4  ;;  %s449_s20 = int_to_ptr.vmem [resolvable:$true] %s448_s20 }
  0x24   : > { %s464_s27 = sshll.u32 %s4276_s15, 4  ;;  %s5195_s4 = sld [smem:[#allocation29_spill]]  ;;  %s4455_s27 = int_to_ptr.vmem [resolvable:$true] %s464_s27 }
  0x25   : > { %s5192_s18 = scalar_select %p4443_p3, 1, 0 }
  0x26   : > { %p3628_p4 = pneg %p4443_p3 }
  0x27   : > { %5193 = sst [smem:[#allocation23_spill]] %s5192_s18 }
  0x28   : > { %p4451_p5 = pnand %p3628_p4, %p5158_p1 }
  0x2a   : > { %s3935_s11 = scalar_lea.hbm %s5195_s4, 1024  ;;  %p4465_p7 = pneg %p4451_p5 }
  0x2b   : > { %p3936_p6 = scmp.ne.s32.totalorder %s5195_s4, %s3935_s11  ;;  %p3942_p10 = scmp.lt.u32.totalorder %s3935_s11, %s5195_s4 }
  0x2d   : > { %p3938_p8 = pnand %p4465_p7, %p3936_p6 }
  0x2f   : > { %p3939_p9 = pneg %p3938_p8 }
  0x31   : > { %p3944_p11 = pnand %p3942_p10, %p3939_p9 }
  0x33   : > { %3947 = shalt.err (!%p3944_p11)
}
  0x34   : > { %s3948_s13 = scalar_lea.vmem %s449_s20, 1024  ;;  %p3956_p2 = scmp.lt.s32.totalorder %s449_s20, %s449_s20 }
  0x35   : > { %p3949_p12 = scmp.ne.s32.totalorder %s449_s20, %s3948_s13  ;;  %p3957_p4 = scmp.lt.s32.totalorder %s3948_s13, %s3948_s13 }
  0x37   : > { %p3951_p13 = pnand %p3949_p12, %p4465_p7  ;;  %p3958_p1 = por %p3957_p4, %p3956_p2 }
  0x39   : > { %p3952_p0 = pneg %p3951_p13 }
  0x3b   : > { %p3959_p3 = pnand %p3958_p1, %p3952_p0 }
  0x3d   : > { %3962 = shalt.err (!%p3959_p3)
}
  0x3e   : > { %s5161_s9 = smov 64   ;;  %s5163_s10 = smov 4  }
  0x3f   : > { %3631 = dma.hbm_to_vmem [thread:$0]  (!%p4451_p5), %s5195_s4, 1024, %s449_s20, [#allocation6], %s5161_s9, %s5161_s9, %s5163_s10  }
  0x40   : > { %s5197_s6 = sld [smem:[#allocation31_spill]] }
  0x46   : > { %s3963_s7 = scalar_lea.hbm %s5197_s6, 2048 }
  0x47   : > { %p3964_p1 = scmp.ne.s32.totalorder %s5197_s6, %s3963_s7  ;;  %p3970_p8 = scmp.lt.u32.totalorder %s3963_s7, %s5197_s6 }
  0x49   : > { %p3966_p3 = pnand %p3964_p1, %p4465_p7 }
  0x4b   : > { %p3967_p6 = pneg %p3966_p3 }
  0x4d   : > { %p3972_p9 = pnand %p3970_p8, %p3967_p6 }
  0x4f   : > { %3975 = shalt.err (!%p3972_p9)
}
  0x50   : > { %s3976_s20 = scalar_lea.vmem %s4455_s27, 2048  ;;  %p3984_p13 = scmp.lt.s32.totalorder %s4455_s27, %s4455_s27 }
  0x51   : > { %p3977_p10 = scmp.ne.s32.totalorder %s4455_s27, %s3976_s20  ;;  %p3985_p0 = scmp.lt.s32.totalorder %s3976_s20, %s3976_s20 }
  0x53   : > { %p3979_p11 = pnand %p3977_p10, %p4465_p7  ;;  %p3986_p2 = por %p3985_p0, %p3984_p13 }
  0x55   : > { %p3980_p12 = pneg %p3979_p11 }
  0x57   : > { %p3987_p4 = pnand %p3986_p2, %p3980_p12 }
  0x59   : > { %3990 = shalt.err (!%p3987_p4)
}
  0x5a   : > { %s5165_s3 = smov 128   ;;  %s5166_s2 = smov 8  }
  0x5b   : > { %3634 = dma.hbm_to_vmem [thread:$0]  (!%p4451_p5), %s5197_s6, 2048, %s4455_s27, [#allocation9], %s5165_s3, %s5165_s3, %s5166_s2  }
  0x5c   : > { %s4281_s5 = smov [#allocation11]   ;;  %s5198_s12 = sld [smem:[#allocation37_spill]] }
  0x5d   : > { %s502_s11 = sshll.u32 %s4281_s5, 4  ;;  %s503_s11 = int_to_ptr.vmem [resolvable:$true] %s502_s11 }
  0x62   : > { %s3991_s13 = scalar_lea.hbm %s5198_s12, 4096 }
  0x63   : > { %p3992_p1 = scmp.ne.s32.totalorder %s5198_s12, %s3991_s13  ;;  %p3998_p8 = scmp.lt.u32.totalorder %s3991_s13, %s5198_s12 }
  0x65   : > { %p3994_p3 = pnand %p3992_p1, %p4465_p7 }
  0x67   : > { %p3995_p6 = pneg %p3994_p3 }
  0x69   : > { %p4000_p9 = pnand %p3998_p8, %p3995_p6 }
  0x6b   : > { %4003 = shalt.err (!%p4000_p9)
}
  0x6c   : > { %s4004_s27 = scalar_lea.vmem %s503_s11, 4096  ;;  %p4012_p13 = scmp.lt.s32.totalorder %s503_s11, %s503_s11 }
  0x6d   : > { %p4005_p10 = scmp.ne.s32.totalorder %s503_s11, %s4004_s27  ;;  %p4013_p0 = scmp.lt.s32.totalorder %s4004_s27, %s4004_s27 }
  0x6f   : > { %p4007_p11 = pnand %p4005_p10, %p4465_p7  ;;  %p4014_p2 = por %p4013_p0, %p4012_p13 }
  0x71   : > { %p4008_p12 = pneg %p4007_p11 }
  0x73   : > { %p4015_p4 = pnand %p4014_p2, %p4008_p12 }
  0x75   : > { %4018 = shalt.err (!%p4015_p4)
}
  0x76   : > { %s4282_s9 = smov 256   ;;  %s4283_s7 = smov 16  }
  0x77   : > { %3640 = dma.hbm_to_vmem [thread:$0]  (!%p4451_p5), %s5198_s12, 4096, %s503_s11, [#allocation12], %s4282_s9, %s4282_s9, %s4283_s7  }
  0x78   : > { %s4284_s18 = smov [#allocation10]   ;;  %s4285_s28 = smov [#allocation13]  }
  0x79   : > { %s480_s5 = sshll.u32 %s4284_s18, 4  ;;  %s518_s15 = sshll.u32 %s4285_s28, 4  ;;  %s481_s5 = int_to_ptr.vmem [resolvable:$true] %s480_s5  ;;  %s519_s15 = int_to_ptr.vmem [resolvable:$true] %s518_s15 }
  0x7a   : > { %s5199_s8 = sld [smem:[#allocation33_spill]] }
  0x80   : > { %s4019_s27 = scalar_lea.hbm %s5199_s8, 1024 }
  0x81   : > { %p4020_p1 = scmp.ne.s32.totalorder %s5199_s8, %s4019_s27  ;;  %p4026_p8 = scmp.lt.u32.totalorder %s4019_s27, %s5199_s8 }
  0x83   : > { %p4022_p3 = pnand %p4020_p1, %p4465_p7 }
  0x85   : > { %p4023_p6 = pneg %p4022_p3 }
  0x87   : > { %p4028_p9 = pnand %p4026_p8, %p4023_p6 }
  0x89   : > { %4031 = shalt.err (!%p4028_p9)
}
  0x8a   : > { %s4032_s11 = scalar_lea.vmem %s481_s5, 1024  ;;  %p4040_p13 = scmp.lt.s32.totalorder %s481_s5, %s481_s5 }
  0x8b   : > { %p4033_p10 = scmp.ne.s32.totalorder %s481_s5, %s4032_s11  ;;  %p4041_p0 = scmp.lt.s32.totalorder %s4032_s11, %s4032_s11 }
  0x8d   : > { %p4035_p11 = pnand %p4033_p10, %p4465_p7  ;;  %p4042_p2 = por %p4041_p0, %p4040_p13 }
  0x8f   : > { %p4036_p12 = pneg %p4035_p11 }
  0x91   : > { %p4043_p4 = pnand %p4042_p2, %p4036_p12 }
  0x93   : > { %4046 = shalt.err (!%p4043_p4)
}
  0x94   : > { %s5200_s3 = smov 4   ;;  %s5201_s2 = smov 64  }
  0x95   : > { %3637 = dma.hbm_to_vmem [thread:$0]  (!%p4451_p5), %s5199_s8, 1024, %s481_s5, [#allocation9], %s5201_s2, %s5201_s2, %s5200_s3  }
  0x96   : > { %s5202_s14 = sld [smem:[#allocation39_spill]] }
  0x9c   : > { %s4047_s4 = scalar_lea.hbm %s5202_s14, 4096 }
  0x9d   : > { %p4048_p1 = scmp.ne.s32.totalorder %s5202_s14, %s4047_s4  ;;  %p4054_p8 = scmp.lt.u32.totalorder %s4047_s4, %s5202_s14 }
  0x9f   : > { %p4050_p3 = pnand %p4048_p1, %p4465_p7 }
  0xa1   : > { %p4051_p6 = pneg %p4050_p3 }
  0xa3   : > { %p4056_p9 = pnand %p4054_p8, %p4051_p6 }
  0xa5   : > { %4059 = shalt.err (!%p4056_p9)
}
  0xa6   : > { %s4060_s20 = scalar_lea.vmem %s519_s15, 4096  ;;  %p4068_p13 = scmp.lt.s32.totalorder %s519_s15, %s519_s15 }
  0xa7   : > { %p4061_p10 = scmp.ne.s32.totalorder %s519_s15, %s4060_s20  ;;  %p4069_p0 = scmp.lt.s32.totalorder %s4060_s20, %s4060_s20 }
  0xa9   : > { %p4063_p11 = pnand %p4061_p10, %p4465_p7  ;;  %p4070_p2 = por %p4069_p0, %p4068_p13 }
  0xab   : > { %p4064_p12 = pneg %p4063_p11 }
  0xad   : > { %p4071_p4 = pnand %p4070_p2, %p4064_p12 }
  0xaf   : > { %4074 = shalt.err (!%p4071_p4)
}
  0xb0   : > { %3643 = dma.hbm_to_vmem [thread:$0]  (!%p4451_p5), %s5202_s14, 4096, %s519_s15, [#allocation12], %s5201_s2, %s5201_s2, %s5200_s3  }
  0xb1   : > { %s3280_s16 = sadd.s32 4294967294, %s4273_s0   ;;  %s46_s19 = sadd.s32 1, %s4265_s29 }
  0xb2   : > { %s49_s11 = sadd.s32 1, %s4269_s30  ;;  %p47_p7 = scmp.ge.s32.totalorder %s46_s19, 2 }
  0xb3   : > { %s58_s1 = sadd.s32 1, %s4253_s26  ;;  %p65_p1 = scmp.ne.s32.totalorder %s4253_s26, %s4249_s25 }
  0xb4   : > { %p66_p3 = scmp.eq.s32.totalorder %s4273_s0, 0  ;;  %s5255_s19 = smov (%p47_p7, %s46_s19), 0 }
  0xb5   : > { %s5257_s11 = smov (!%p47_p7, %s49_s11), %s4269_s30  ;;  %s54_s15 = ssub.s32 %s4265_s29, %s5255_s19 }
  0xb6   : > { %p4585_p5 = por %p66_p3, %p65_p1  ;;  %p51_p6 = scmp.ge.s32.totalorder %s5257_s11, 2 }
  0xb7   : > { %p71_p8 = scmp.ne.s32.totalorder %s4249_s25, %s4245_s24  ;;  %s84_s2 = sadd.s32 1, %s4241_s23 }
  0xb8   : > { %p91_p9 = scmp.ne.s32.totalorder %s4241_s23, %s4237_s22  ;;  %s5259_s11 = smov (%p51_p6, %s5257_s11), 0 }
  0xb9   : > { %5204 = sst [smem:[#allocation24_spill]] %s5259_s11  ;;  %p5205_p10 = scmp.eq.s32.totalorder %s4438_s17, 0 }
  0xba   : > { %p4605_p12 = por %p91_p9, %p66_p3  ;;  %s53_s7 = ssub.s32 %s4269_s30, %s5259_s11 }
  0xbb   : > { %p4601_p11 = por %p5205_p10, %p71_p8  ;;  %p97_p13 = scmp.ne.s32.totalorder %s4237_s22, %s4233_s21 }
  0xbc   : > { %s55_s4 = sor.u32 %s54_s15, %s53_s7  ;;  %p82_p0 = scmp.eq.s32.totalorder %s53_s7, 0 }
  0xbd   : > { %s5206_s6 = scalar_select %p4601_p11, 1, 0 }
  0xbe   : > { %p56_p2 = scmp.eq.s32.totalorder %s55_s4, 0  ;;  %p5208_p4 = pmov %p5205_p10 }
  0xbf   : > { %s4620_s18 = scalar_select %p82_p0, %s4241_s23, %s84_s2  }
  0xc0   : > { %p4615_p7 = por %p97_p13, %p5208_p4  ;;  %p417_p3 = scmp.eq.s32.totalorder %s4438_s17, 3 }
  0xc1   : > { %s4623_s28 = scalar_select %p56_p2, %s4253_s26, %s58_s1  }
  0xc2   : > { %s5209_s10 = scalar_select %p4615_p7, 1, 0 }
  0xc3   : > { %p423_p6 = scmp.eq.s32.totalorder %s3280_s16, 3  ;;  %p3660_p9 = scmp.lt.s32.totalorder %s4273_s0, 4 }
  0xc4   : > { %s535_s21 = sand.u32 1, %s4253_s26   ;;  %p4631_p10 = por %p417_p3, %p65_p1 }
  0xc5   : > { %p4638_p13 = por %p423_p6, %p71_p8  ;;  %s3288_s5 = sshll.u32 %s535_s21, 3 }
  0xc6   : > { %s5210_s13 = scalar_select %p4631_p10, 1, 0 }
  0xc7   : > { %s5211_s20 = scalar_select %p4638_p13, 1, 0 }
  0xc8   : > { %s3289_s27 = sshll.u32 %s4269_s30, 1  ;;  %s539_s15 = scalar_lea.vmem [#allocation2], %s3288_s5 }
  0xc9   : > { %s544_s1 = sadd.s32 %s4265_s29, %s3289_s27  ;;  %s548_s2 = sshll.u32 %s539_s15, 4  ;;  %s4644_s2 = int_to_ptr.vmem [resolvable:$true] %s548_s2 }
  0xca   : > { %s3290_s7 = sshll.u32 %s544_s1, 7  ;;  %s5212_s8 = sld [smem:[#allocation25_spill]] }
  0xcb   : > { %p4655_p1 = pnand %p3660_p9, %p4585_p5  ;;  %p4663_p8 = pnand %p3660_p9, %p4605_p12 }
  0xcc   : > { %s536_s1 = scalar_lea.sflag [#allocation3], %s535_s21 }
  0xcd   : > { %p4077_p2 = pneg %p4655_p1 }
  0xd0   : > { %s4649_s12 = scalar_lea.hbm %s5212_s8, %s3290_s7  ;;  %s4080_s9 = scalar_lea.hbm %s5212_s8, 512 }
  0xd1   : > { %s4075_s3 = scalar_lea.hbm %s4649_s12, 128  ;;  %p4081_p12 = scmp.lt.u32.totalorder %s4649_s12, %s5212_s8 }
  0xd2   : > { %p4076_p0 = scmp.ne.s32.totalorder %s4649_s12, %s4075_s3  ;;  %p4082_p3 = scmp.lt.u32.totalorder %s4080_s9, %s4075_s3 }
  0xd3   : > { %p4084_p9 = scmp.lt.u32.totalorder %s4075_s3, %s4649_s12 }
  0xd4   : > { %p4078_p5 = pnand %p4077_p2, %p4076_p0  ;;  %p4083_p6 = por %p4082_p3, %p4081_p12 }
  0xd6   : > { %p4079_p4 = pneg %p4078_p5  ;;  %p4085_p13 = por %p4084_p9, %p4083_p6 }
  0xd8   : > { %p4086_p10 = pnand %p4085_p13, %p4079_p4 }
  0xda   : > { %4089 = shalt.err (!%p4086_p10)
}
  0xdb   : > { %s4090_s21 = scalar_lea.vmem %s4644_s2, 128  ;;  %s4286_s15 = smov [#allocation2]  }
  0xdc   : > { %p4091_p0 = scmp.ne.s32.totalorder %s4644_s2, %s4090_s21  ;;  %s4095_s7 = sshll.u32 %s4286_s15, 4  ;;  %s4096_s7 = int_to_ptr.vmem [resolvable:$false] %s4095_s7 }
  0xdd   : > { %s4097_s16 = scalar_lea.vmem %s4096_s7, 256  ;;  %p4098_p11 = scmp.lt.s32.totalorder %s4644_s2, %s4096_s7 }
  0xde   : > { %p4093_p5 = pnand %p4091_p0, %p4077_p2  ;;  %p4099_p12 = scmp.lt.s32.totalorder %s4097_s16, %s4090_s21 }
  0xe0   : > { %p4094_p7 = pneg %p4093_p5  ;;  %p4100_p3 = por %p4099_p12, %p4098_p11 }
  0xe2   : > { %p4101_p6 = pnand %p4100_p3, %p4094_p7 }
  0xe4   : > { %4104 = shalt.err (!%p4101_p6)
}
  0xe5   : > { %3647 = dma.hbm_to_vmem [thread:$0]  (!%p4655_p1), %s4649_s12, 128, %s4644_s2, %s536_s1  }
  0xe6   : > { %s557_s3 = sand.u32 1, %s4241_s23   ;;  %s3435_s4 = sshll.u32 %s4269_s30, 8 }
  0xe7   : > { %s3291_s9 = sshll.u32 %s557_s3, 4  ;;  %s5215_s7 = sld [smem:[#allocation26_spill]] }
  0xe8   : > { %s559_s14 = scalar_lea.vmem [#allocation5], %s3291_s9  ;;  %s5216_s8 = sand.u32 1, %s4273_s0  }
  0xe9   : > { %s566_s16 = sshll.u32 %s559_s14, 4  ;;  %s4704_s11 = scalar_lea.sflag [#allocation6], %s5216_s8  ;;  %s4700_s16 = int_to_ptr.vmem [resolvable:$true] %s566_s16 }
  0xea   : > { %p4107_p7 = pneg %p4663_p8 }
  0xed   : > { %s4698_s21 = scalar_lea.hbm %s5215_s7, %s3435_s4  ;;  %s4110_s1 = scalar_lea.hbm %s5215_s7, 512 }
  0xee   : > { %s4105_s12 = scalar_lea.hbm %s4698_s21, 256  ;;  %p4111_p1 = scmp.lt.u32.totalorder %s4698_s21, %s5215_s7 }
  0xef   : > { %p4106_p11 = scmp.ne.s32.totalorder %s4698_s21, %s4105_s12  ;;  %p4112_p2 = scmp.lt.u32.totalorder %s4110_s1, %s4105_s12 }
  0xf0   : > { %p4114_p9 = scmp.lt.u32.totalorder %s4105_s12, %s4698_s21 }
  0xf1   : > { %p4108_p10 = pnand %p4107_p7, %p4106_p11  ;;  %p4113_p4 = por %p4112_p2, %p4111_p1 }
  0xf3   : > { %p4109_p13 = pneg %p4108_p10  ;;  %p4115_p0 = por %p4114_p9, %p4113_p4 }
  0xf5   : > { %p4116_p5 = pnand %p4115_p0, %p4109_p13 }
  0xf7   : > { %4119 = shalt.err (!%p4116_p5)
}
  0xf8   : > { %s4120_s8 = scalar_lea.vmem %s4700_s16, 256  ;;  %s4287_s4 = smov [#allocation5]  }
  0xf9   : > { %p4121_p12 = scmp.ne.s32.totalorder %s4700_s16, %s4120_s8  ;;  %s4125_s15 = sshll.u32 %s4287_s4, 4  ;;  %s4126_s15 = int_to_ptr.vmem [resolvable:$false] %s4125_s15 }
  0xfa   : > { %s4127_s14 = scalar_lea.vmem %s4126_s15, 512  ;;  %p4128_p11 = scmp.lt.s32.totalorder %s4700_s16, %s4126_s15 }
  0xfb   : > { %p4123_p3 = pnand %p4121_p12, %p4107_p7  ;;  %p4129_p10 = scmp.lt.s32.totalorder %s4127_s14, %s4120_s8 }
  0xfd   : > { %p4124_p6 = pneg %p4123_p3  ;;  %p4130_p1 = por %p4129_p10, %p4128_p11 }
  0xff   : > { %p4131_p2 = pnand %p4130_p1, %p4124_p6 }
 0x101   : > { %4134 = shalt.err (!%p4131_p2)
}
 0x102   : > { %s5217_s12 = smov 8   ;;  %s5218_s2 = smov 128  }
 0x103   : > { %3650 = dma.hbm_to_vmem [thread:$0]  (!%p4663_p8), %s4698_s21, 256, %s4700_s16, %s4704_s11, %s5218_s2, %s5218_s2, %s5217_s12  }
 0x104   : > { %s5219_s27 = sld [smem:[#allocation23_spill]] }
 0x10a   : > { %p5220_p7 = scmp.ne.s32.totalorder %s5219_s27, 0 }
 0x10b   : > { %s4738_s1 = sand.u32 (!%p5220_p7), 1, %s4249_s25   ;;  %p5221_p13 = scmp.ne.s32.totalorder (!%p5220_p7), %s5206_s6, 0 }
 0x10c   : > { %578 = sbr.rel (%p5220_p7) target bundleno = 2778 (0xada), region = 84  ;;  %s3295_s3 = sshll.u32 (!%p5220_p7), %s4738_s1, 3 }
 0x10d   : > { %s581_s9 = scalar_lea.sflag (!%p5220_p7), [#allocation3], %s4738_s1  ;;  %s4744_s5 = scalar_lea.vmem (!%p5220_p7), [#allocation2], %s3295_s3 }
 0x113   : > { %4208 = dma.done.wait (%p5221_p13), %s581_s9, 128  }
 0x114   : > { %4210 = vsyncadd (%p5221_p13), %s581_s9, 4294967168  ;;  %s589_s11 = sand.u32 1, %s4438_s17   ;;  %s591_s21 = sand.u32 1, %s4237_s22  }
 0x115   : > { %s3296_s16 = sshll.u32 %s591_s21, 4  ;;  %s590_s8 = scalar_lea.sflag [#allocation6], %s589_s11 }
 0x116   : > { %s593_s4 = scalar_lea.vmem [#allocation5], %s3296_s16  ;;  %p5222_p8 = scmp.ne.s32.totalorder %s5209_s10, 0 }
 0x118   : > { %4212 = dma.done.wait (%p5222_p8), %s590_s8, 256  }
 0x119   : > { %4214 = vsyncadd (%p5222_p8), %s590_s8, 4294967040  ;;  %p5223_p4 = scmp.eq.s32.totalorder %s4438_s17, 0 }
 0x11b   : > { %4216 = dma.done.wait (%p5223_p4), [#allocation6], 1024   ;;  %p5224_p9 = pmov %p5223_p4 }
 0x11c   : > { %p5225_p0 = pmov %p5223_p4 }
 0x11d   : > { %4218 = vsyncadd (%p5224_p9), [#allocation6], 4294966272 }
 0x11e   : > { %4220 = dma.done.wait (%p5225_p0), [#allocation9], 3072   ;;  %p5226_p5 = pmov %p5225_p0 }
 0x11f   : > { %p5227_p12 = pmov %p5225_p0 }
 0x120   : > { %4222 = vsyncadd (%p5226_p5), [#allocation9], 4294964224 }
 0x121   : > { %4224 = dma.done.wait (%p5227_p12), [#allocation12], 8192   ;;  %p5228_p3 = pmov %p5225_p0 }
 0x122   : > { %v669_v0 = vld [vmem:[%s593_s4] sm:$0xff]  ;;  %v670_v1 = vld [vmem:[%s593_s4 + $0x8] sm:$0xff]  ;;  %v4288_v6 = vmov 0.0   ;;  %vm4289_vm0 = vmmov 0   ;;  %v4290_v32 = vmov 0   ;;  %s5229_s10 = sld [smem:[#allocation27_spill]] }
 0x123   : > { %4226 = vsyncadd (%p5228_p3), [#allocation12], 4294959104  ;;  %v668_v2 = vld [vmem:[%s4744_s5] sm:$0xff]  ;;  %699 = vadd.xlane.f32.xlu0 %v669_v0  ;;  %v3774_v3 = vld [vmem:[#allocation8 + $0x4] ss:$8 sps:$4 sm:$0xff]   ;;  %3514 = vmatprep.subr.bf16.mxu0 %v4288_v6  ;;  %s5230_s12 = sld [smem:[#allocation28_spill]] }
 0x124   : > { %673 = vadd.xlane.f32.xlu1 %v668_v2  ;;  %v3776_v4 = vld [vmem:[#allocation7] sm:$0xff]   ;;  %v3778_v7 = vld [vmem:[#allocation8 + $0x14] ss:$8 sps:$4 sm:$0xff]   ;;  %946 = vmatprep.subr.bf16.mxu1 %v3774_v3  ;;  %v3780_v20 = vld [vmem:[#allocation7 + $0x8] sm:$0xff]   ;;  %s5231_s9 = sld [smem:[#allocation32_spill]]  ;;  %s4291_s11 = smov 64  }
 0x125   : > { %v3777_v5 = vld [vmem:[#allocation8] ss:$8 sps:$4 sm:$0xff]   ;;  %3515 = vmatpush3.bf16.msra.mxu0 %v3776_v4  ;;  %v3781_v21 = vld [vmem:[#allocation8 + $0x10] ss:$8 sps:$4 sm:$0xff]   ;;  %v3782_v22 = vld [vmem:[#allocation8 + $0x24] ss:$8 sps:$4 sm:$0xff]   ;;  %3530 = vmatprep.mubr.msk.bf16.mxu0 %vm4289_vm0, %v4288_v6 }
 0x126   : > { %947 = vmatpush1.bf16.msra.mxu1 %v3777_v5  ;;  %3516 = vmatprep.subr.bf16.mxu0 %v4288_v6  ;;  %v3784_v23 = vld [vmem:[#allocation7 + $0x10] sm:$0xff]   ;;  %v3785_v24 = vld [vmem:[#allocation8 + $0x20] ss:$8 sps:$4 sm:$0xff]   ;;  %v3788_v26 = vld [vmem:[#allocation7 + $0x18] sm:$0xff]   ;;  %s4292_s21 = smov 96   ;;  %s5232_s4 = sld [smem:[#allocation30_spill]] }
 0x127   : > { %701 = vadd.xlane.f32.xlu0 %v670_v1  ;;  %948 = vmatprep.subr.bf16.mxu1 %v3778_v7  ;;  %v3786_v25 = vld [vmem:[#allocation8 + $0x34] ss:$8 sps:$4 sm:$0xff]   ;;  %v3789_v27 = vld [vmem:[#allocation8 + $0x30] ss:$8 sps:$4 sm:$0xff]   ;;  %v3790_v28 = vld [vmem:[#allocation8 + $0x44] ss:$8 sps:$4 sm:$0xff]  }
 0x128   : > { %v3792_v29 = vld [vmem:[#allocation7 + $0x20] sm:$0xff]   ;;  %v3794_v31 = vld [vmem:[#allocation8 + $0x54] ss:$8 sps:$4 sm:$0xff]   ;;  %978 = vmatprep.mubr.bf16.mxu1 %v4290_v32  ;;  %v3796_v33 = vld [vmem:[#allocation7 + $0x28] sm:$0xff]   ;;  %s4293_s17 = smov 32   ;;  %vm1727_vm1 = vcmask 261120  }
 0x129   : > { %3517 = vmatpush3.bf16.msra.mxu0 %v3780_v20  ;;  %v3793_v30 = vld [vmem:[#allocation8 + $0x40] ss:$8 sps:$4 sm:$0xff]   ;;  %v3797_v34 = vld [vmem:[#allocation8 + $0x50] ss:$8 sps:$4 sm:$0xff]   ;;  %v3798_v35 = vld [vmem:[#allocation8 + $0x64] ss:$8 sps:$4 sm:$0xff]  }
 0x12a   : > { %949 = vmatpush1.bf16.msra.mxu1 %v3781_v21  ;;  %3518 = vmatprep.subr.bf16.mxu0 %v4288_v6  ;;  %v3800_v36 = vld [vmem:[#allocation7 + $0x30] sm:$0xff]   ;;  %v3801_v37 = vld [vmem:[#allocation8 + $0x60] ss:$8 sps:$4 sm:$0xff]   ;;  %v3804_v39 = vld [vmem:[#allocation7 + $0x38] sm:$0xff]   ;;  %vm1912_vm2 = vcmask 130048   ;;  %vm2286_vm3 = vcmask 523264  }
 0x12b   : > { %950 = vmatprep.subr.bf16.mxu1 %v3782_v22  ;;  %v3802_v38 = vld [vmem:[#allocation8 + $0x74] ss:$8 sps:$4 sm:$0xff]   ;;  %v3805_v40 = vld [vmem:[#allocation8 + $0x70] ss:$8 sps:$4 sm:$0xff]   ;;  %vm2288_vm4 = vcmask 785408   ;;  %s5233_s15 = sld [smem:[#allocation34_spill]] }
 0x12c   : > { %v3303_v52 = vld [vmem:[%s5229_s10] ss:$0 sm:$0xff]  ;;  %s5236_s16 = sld [smem:[#allocation38_spill]]  ;;  %s5237_s8 = sld [smem:[#allocation22_spill]] }
 0x12d   : > { %3519 = vmatpush3.bf16.msra.mxu0 %v3784_v23  ;;  %v3304_v57 = vld [vmem:[%s5230_s12] ss:$0 sm:$0xff]  ;;  %s5234_s12 = sld [smem:[#allocation35_spill]]  ;;  %p5241_p11 = scmp.ne.s32.totalorder %s5210_s13, 0 }
 0x12e   : > { %951 = vmatpush1.bf16.msra.mxu1 %v3785_v24  ;;  %3520 = vmatprep.subr.bf16.mxu0 %v4288_v6  ;;  %v854_v5 = vld [vmem:[%s5231_s9] sm:$0x3]  ;;  %v4294_v24 = vmov 1983009808   ;;  %s5235_s9 = sld [smem:[#allocation36_spill]] }
 0x12f   : > { %952 = vmatprep.subr.bf16.mxu1 %v3786_v25  ;;  %v1002_v25 = vunpack.c.l.s4 %v4294_v24 }
 0x131   : > { %3521 = vmatpush3.bf16.msra.mxu0 %v3788_v26  ;;  %v4295_v26 = vmov 1934713408  }
 0x132   : > { %953 = vmatpush1.bf16.msra.mxu1 %v3789_v27  ;;  %3522 = vmatprep.subr.bf16.mxu0 %v4288_v6  ;;  %v1034_v27 = vunpack.c.l.s4 %v4295_v26 }
 0x133   : > { %954 = vmatprep.subr.bf16.mxu1 %v3790_v28  ;;  %v1003_v28 = vunpack.c.0.s8 %v1002_v25 }
 0x135   : > { %3523 = vmatpush3.bf16.msra.mxu0 %v3792_v29 }
 0x136   : > { %955 = vmatpush1.bf16.msra.mxu1 %v3793_v30  ;;  %3524 = vmatprep.subr.bf16.mxu0 %v4288_v6 }
 0x137   : > { %956 = vmatprep.subr.bf16.mxu1 %v3794_v31  ;;  %v1035_v31 = vunpack.c.0.s8 %v1034_v27 }
 0x139   : > { %3525 = vmatpush3.bf16.msra.mxu0 %v3796_v33 }
 0x13a   : > { %957 = vmatpush1.bf16.msra.mxu1 %v3797_v34  ;;  %3526 = vmatprep.subr.bf16.mxu0 %v4288_v6 }
 0x13b   : > { %958 = vmatprep.subr.bf16.mxu1 %v3798_v35 }
 0x13d   : > { %3527 = vmatpush3.bf16.msra.mxu0 %v3800_v36 }
 0x13e   : > { %959 = vmatpush1.bf16.msra.mxu1 %v3801_v37  ;;  %3528 = vmatprep.subr.bf16.mxu0 %v4288_v6 }
 0x13f   : > { %960 = vmatprep.subr.bf16.mxu1 %v3802_v38 }
 0x141   : > { %3529 = vmatpush3.bf16.msra.mxu0 %v3804_v39 }
 0x142   : > { %961 = vmatpush1.bf16.msra.mxu1 %v3805_v40  ;;  %3558 = vmatprep.subr.bf16.mxu0 %v4288_v6 }
 0x143   : > { %3534 = vmatprep.subr.bf16.mxu1 %v4288_v6 }
 0x1b0   : > { %v700_v8 = vpop.xlane.xlu0 %699 }
 0x1b1   : > { %v674_v9 = vpop.xlane.xlu1 %673  ;;  %v703_v10 = vmul.f32 0.0078125, %v700_v8 }
 0x1b2   : > { %v676_v11 = vmul.f32 0.0078125, %v674_v9 }
 0x1b3   : > { %v4771_v12 = vsub.f32 %v669_v0, %v703_v10 }
 0x1b4   : > { %v4773_v13 = vsub.f32 %v668_v2, %v676_v11  ;;  %v702_v14 = vpop.xlane.xlu0 %701  ;;  %v856_v2 = vlaneseq }
 0x1b5   : > { %v704_v15 = vmul.f32 0.0078125, %v702_v14  ;;  %v707_v16 = vmul.f32 %v4771_v12, %v4771_v12 }
 0x1b6   : > { %v678_v18 = vmul.f32 %v4773_v13, %v4773_v13  ;;  %v4807_v3 = vshrl.u32 %v856_v2, 7 }
 0x1b7   : > { %v4777_v17 = vsub.f32 %v670_v1, %v704_v15  ;;  %709 = vadd.xlane.f32.xlu1 %v707_v16 }
 0x1b8   : > { %v858_v4 = vsub.s32 0, %v4807_v3  ;;  %v862_v20 = vsub.s32 1, %v4807_v3  ;;  %v4848_v33 = vsub.s32 %v1003_v28, %v4807_v3  ;;  %v4851_v40 = vsub.s32 %v1035_v31, %v4807_v3 }
 0x1b9   : > { %v708_v19 = vmul.f32 %v4777_v17, %v4777_v17 }
 0x1ba   : > { %v859_v7 = vrot.slane %v854_v5, %v858_v4  ;;  %v863_v21 = vrot.slane %v854_v5, %v862_v20 }
 0x1bb   : > { %711 = vadd.xlane.f32.xlu0 %v708_v19  ;;  %679 = vadd.xlane.f32.xlu1 %v678_v18  ;;  %v3305_v18 = vld [vmem:[%s5232_s4] ss:$0 sm:$0xff]  ;;  %s5238_s4 = sld [smem:[#allocation21_spill]] }
 0x244   : > { %v710_v41 = vpop.xlane.xlu1 %709 }
 0x245   : > { %v713_v42 = vmul.f32 0.0078125, %v710_v41 }
 0x247   : > { %v715_v43 = vadd.f32 1e-05, %v713_v42 }
 0x248   : > { %v712_v44 = vpop.xlane.xlu0 %711  ;;  %v680_v45 = vpop.xlane.xlu1 %679 }
 0x249   : > { %3894 = vrsqrt.f32 %v715_v43  ;;  %v714_v46 = vmul.f32 0.0078125, %v712_v44  ;;  %v681_v47 = vmul.f32 0.0078125, %v680_v45 }
 0x24b   : > { %v716_v48 = vadd.f32 1e-05, %v714_v46  ;;  %v682_v49 = vadd.f32 1e-05, %v681_v47 }
 0x24d   : > { %3896 = vrsqrt.f32 %v716_v48 }
 0x24e   : > { %3898 = vrsqrt.f32 %v682_v49 }
 0x253   : > { %v3895_v50 = vpop.eup %3894 }
 0x254   : > { %v719_v51 = vmul.f32 %v3895_v50, %v4771_v12 }
 0x256   : > { %v721_v56 = vmul.f32 %v3303_v52, %v719_v51 }
 0x257   : > { %v3897_v53 = vpop.eup %3896 }
 0x258   : > { %v3899_v54 = vpop.eup %3898  ;;  %v720_v55 = vmul.f32 %v3897_v53, %v4777_v17  ;;  %v723_v61 = vadd.f32 %v3304_v57, %v721_v56 }
 0x259   : > { %v684_v58 = vmul.f32 %v3899_v54, %v4773_v13 }
 0x25a   : > { %v722_v59 = vmul.f32 %v3303_v52, %v720_v55 }
 0x25b   : > { %v691_v60 = vmul.f32 %v3303_v52, %v684_v58 }
 0x25c   : > { %v724_v62 = vadd.f32 %v3304_v57, %v722_v59 }
 0x25d   : > { %v698_v63 = vadd.f32 %v3304_v57, %v691_v60 }
 0x25e   : > { %v837_v0 = vpack.c.bf16 %v724_v62, %v723_v61 }
 0x25f   : > { %v725_v1 = vpack.c.bf16 %v698_v63, %v698_v63 }
 0x260   : > { %979 = vmatmul.mubr.bf16.vlgmr.msra.gmra.mrb[0].mxu1 %v837_v0 }
 0x261   : > { %3531 = vmatmul.mubr.bf16.vlgmr.msra.gmra.mrb[0].mxu0 %v725_v1  ;;  %3536 = vmatprep.mubr.msk.bf16.mxu1 %vm4289_vm0, %v4288_v6 }
 0x262   : > { %3560 = vmatprep.mubr.msk.bf16.mxu0 %vm4289_vm0, %v4288_v6 }
 0x333   : > { %v980_v8 = vpop.f32.mrb[0].mxu1 }
 0x334   : > { %v831_v9 = vpop.f32.mrb[0].mxu0  ;;  %v981_v10 = vadd.f32 %v980_v8, %v859_v7  ;;  %v982_v11 = vpop.f32.mrb[1].mxu1 }
 0x335   : > { %v3532_v12 = vpop.f32.mrb[1].mxu0  ;;  %v984_v13 = vpop.f32.mrb[2].mxu1  ;;  %v4822_v19 = vadd.f32 %v3305_v18, %v831_v9  ;;  %v4833_v22 = vadd.f32 %v982_v11, %v863_v21 }
 0x336   : > { %v834_v14 = vpop.f32.mrb[2].mxu0  ;;  %v986_v15 = vpop.f32.mrb[3].mxu1  ;;  %1143 = vrot.lane.b32.xlu1 %v981_v10, %s4291_s11  ;;  %1137 = vrot.lane.b32.xlu0 %v981_v10, %s4292_s21  ;;  %v985_v17 = vadd.f32 %v984_v13, %v859_v7 }
 0x337   : > { %v3533_v16 = vpop.f32.mrb[3].mxu0  ;;  %v4839_v23 = vadd.f32 %v986_v15, %v863_v21 }
 0x33a   : > { %1139 = vrot.lane.b32.xlu1 %v985_v17, %s4292_s21  ;;  %1149 = vrot.lane.b32.xlu0 %v981_v10, %s4293_s17 }
 0x33e   : > { %1145 = vrot.lane.b32.xlu1 %v985_v17, %s4291_s11  ;;  %990 = vrot.lane.b32.xlu0 %v4822_v19, %s4292_s21 }
 0x342   : > { %1151 = vrot.lane.b32.xlu1 %v985_v17, %s4293_s17  ;;  %996 = vrot.lane.b32.xlu0 %v4822_v19, %s4293_s17 }
 0x346   : > { %993 = vrot.lane.b32.xlu1 %v4822_v19, %s4291_s11  ;;  %1429 = vrot.lane.b32.xlu0 %v4833_v22, %s4292_s21 }
 0x34a   : > { %1435 = vrot.lane.b32.xlu1 %v4833_v22, %s4291_s11  ;;  %1437 = vrot.lane.b32.xlu0 %v4839_v23, %s4291_s11 }
 0x34e   : > { %1431 = vrot.lane.b32.xlu1 %v4839_v23, %s4292_s21 }
 0x3a8   : > { %v1138_v29 = vpop.permute.xlu0 %1137  ;;  %v1144_v30 = vpop.permute.xlu1 %1143 }
 0x3a9   : > { %v1155_v34 = vcombine.low %v981_v10, %v1144_v30  ;;  %v1156_v35 = vcombine.high %v981_v10, %v1144_v30 }
 0x3ab   : > { %v1163_v41 = vrot.slane %v1155_v34, %v4848_v33  ;;  %v1170_v42 = vrot.slane %v1156_v35, %v4848_v33 }
 0x3ac   : > { %v1150_v36 = vpop.permute.xlu0 %1149  ;;  %v1140_v37 = vpop.permute.xlu1 %1139 }
 0x3ad   : > { %v1171_v38 = vcombine.low %v1138_v29, %v1150_v36  ;;  %v1172_v39 = vcombine.high %v1138_v29, %v1150_v36 }
 0x3af   : > { %v1179_v43 = vrot.slane %v1171_v38, %v4848_v33  ;;  %v1186_v44 = vrot.slane %v1172_v39, %v4848_v33 }
 0x3b0   : > { %v991_v45 = vpop.permute.xlu0 %990  ;;  %v1146_v46 = vpop.permute.xlu1 %1145 }
 0x3b1   : > { %v1187_v47 = vcombine.low %v1163_v41, %v1179_v43  ;;  %v1188_v48 = vcombine.high %v1163_v41, %v1179_v43  ;;  %v1203_v49 = vcombine.low %v1170_v42, %v1186_v44  ;;  %v1204_v50 = vcombine.high %v1170_v42, %v1186_v44 }
 0x3b2   : > { %v1223_v51 = vcombine.low %v985_v17, %v1146_v46  ;;  %v1224_v52 = vcombine.high %v985_v17, %v1146_v46 }
 0x3b3   : > { %v1195_v53 = vrot.slane %v1187_v47, %v4851_v40  ;;  %v1202_v54 = vrot.slane %v1188_v48, %v4851_v40  ;;  %v1211_v55 = vrot.slane %v1203_v49, %v4851_v40  ;;  %v1218_v56 = vrot.slane %v1204_v50, %v4851_v40 }
 0x3b4   : > { %v997_v57 = vpop.permute.xlu0 %996  ;;  %v1152_v58 = vpop.permute.xlu1 %1151  ;;  %v1231_v1 = vrot.slane %v1223_v51, %v4848_v33  ;;  %v1238_v2 = vrot.slane %v1224_v52, %v4848_v33 }
 0x3b5   : > { %v1291_v59 = vcombine.low %v1195_v53, %v1202_v54  ;;  %v3332_v60 = vcombine.high %v1195_v53, %v1202_v54  ;;  %v1307_v61 = vcombine.low %v1211_v55, %v1218_v56  ;;  %v3333_v62 = vcombine.high %v1211_v55, %v1218_v56 }
 0x3b6   : > { %v1239_v63 = vcombine.low %v1140_v37, %v1152_v58  ;;  %v1240_v0 = vcombine.high %v1140_v37, %v1152_v58  ;;  %v1015_v5 = vcombine.low %v991_v45, %v997_v57  ;;  %v1016_v7 = vcombine.high %v991_v45, %v997_v57 }
 0x3b7   : > { %v4864_v8 = vrot.slane %v1291_v59, %v4848_v33  ;;  %v4867_v9 = vrot.slane %v3332_v60, %v4848_v33  ;;  %v4872_v13 = vrot.slane %v1307_v61, %v4848_v33  ;;  %v4875_v14 = vrot.slane %v3333_v62, %v4848_v33 }
 0x3b8   : > { %v1247_v10 = vrot.slane %v1239_v63, %v4848_v33  ;;  %v1254_v11 = vrot.slane %v1240_v0, %v4848_v33  ;;  %v994_v12 = vpop.permute.xlu1 %993  ;;  %v1023_v25 = vrot.slane %v1015_v5, %v4848_v33  ;;  %v1030_v26 = vrot.slane %v1016_v7, %v4848_v33 }
 0x3b9   : > { %v999_v15 = vcombine.low %v4822_v19, %v994_v12  ;;  %v1000_v16 = vcombine.high %v4822_v19, %v994_v12  ;;  %v1323_v47 = vcombine.low %v4864_v8, %v4867_v9  ;;  %v1339_v48 = vcombine.low %v4872_v13, %v4875_v14 }
 0x3ba   : > { %v1255_v17 = vcombine.low %v1231_v1, %v1247_v10  ;;  %v1256_v18 = vcombine.high %v1231_v1, %v1247_v10  ;;  %v1271_v21 = vcombine.low %v1238_v2, %v1254_v11  ;;  %v1272_v24 = vcombine.high %v1238_v2, %v1254_v11 }
 0x3bb   : > { %v1007_v27 = vrot.slane %v999_v15, %v4848_v33  ;;  %v1014_v28 = vrot.slane %v1000_v16, %v4848_v33  ;;  %v1331_v61 = vrot.slane %v1323_v47, %v4851_v40  ;;  %v1347_v62 = vrot.slane %v1339_v48, %v4851_v40 }
 0x3bc   : > { %v1263_v29 = vrot.slane %v1255_v17, %v4851_v40  ;;  %v1270_v30 = vrot.slane %v1256_v18, %v4851_v40  ;;  %v1279_v31 = vrot.slane %v1271_v21, %v4851_v40  ;;  %v1286_v19 = vrot.slane %v1272_v24, %v4851_v40 }
 0x3bd   : > { %v1031_v34 = vcombine.low %v1007_v27, %v1023_v25  ;;  %v1032_v35 = vcombine.high %v1007_v27, %v1023_v25  ;;  %v1047_v36 = vcombine.low %v1014_v28, %v1030_v26  ;;  %v1048_v37 = vcombine.high %v1014_v28, %v1030_v26 }
 0x3be   : > { %v1359_v38 = vcombine.low %v1263_v29, %v1270_v30  ;;  %v3334_v39 = vcombine.high %v1263_v29, %v1270_v30  ;;  %v1375_v41 = vcombine.low %v1279_v31, %v1286_v19  ;;  %v3335_v42 = vcombine.high %v1279_v31, %v1286_v19 }
 0x3bf   : > { %v1039_v43 = vrot.slane %v1031_v34, %v4851_v40  ;;  %v1046_v44 = vrot.slane %v1032_v35, %v4851_v40  ;;  %v1055_v45 = vrot.slane %v1047_v36, %v4851_v40  ;;  %v1062_v46 = vrot.slane %v1048_v37, %v4851_v40 }
 0x3c0   : > { %v1366_v53 = vrot.slane %v1359_v38, %v4848_v33  ;;  %v1374_v54 = vrot.slane %v3334_v39, %v4848_v33  ;;  %v1382_v55 = vrot.slane %v1375_v41, %v4848_v33  ;;  %v1390_v56 = vrot.slane %v3335_v42, %v4848_v33 }
 0x3c1   : > { %v1067_v49 = vcombine.low %v1039_v43, %v1046_v44  ;;  %v3330_v50 = vcombine.high %v1039_v43, %v1046_v44  ;;  %v1083_v51 = vcombine.low %v1055_v45, %v1062_v46  ;;  %v3331_v52 = vcombine.high %v1055_v45, %v1062_v46 }
 0x3c2   : > { %v1391_v63 = vcombine.low %v1366_v53, %v1374_v54  ;;  %v1407_v0 = vcombine.low %v1382_v55, %v1390_v56  ;;  %v1355_v10 = vcombine.low %v1331_v61, %v1347_v62  ;;  %v1392_v21 = vcombine.high %v1366_v53, %v1374_v54 }
 0x3c3   : > { %v1074_v57 = vrot.slane %v1067_v49, %v4848_v33  ;;  %v1082_v58 = vrot.slane %v3330_v50, %v4848_v33  ;;  %v1090_v59 = vrot.slane %v1083_v51, %v4848_v33  ;;  %v1098_v60 = vrot.slane %v3331_v52, %v4848_v33 }
 0x3c4   : > { %v1399_v5 = vrot.slane %v1391_v63, %v4851_v40  ;;  %v1415_v7 = vrot.slane %v1407_v0, %v4851_v40  ;;  %v1408_v24 = vcombine.high %v1382_v55, %v1390_v56  ;;  %v1356_v26 = vcombine.high %v1331_v61, %v1347_v62 }
 0x3c5   : > { %v1099_v1 = vcombine.low %v1074_v57, %v1082_v58  ;;  %v1115_v2 = vcombine.low %v1090_v59, %v1098_v60  ;;  %v1324_v27 = vcombine.high %v4864_v8, %v4867_v9  ;;  %v1340_v28 = vcombine.high %v4872_v13, %v4875_v14 }
 0x3c6   : > { %v1423_v11 = vcombine.low %v1399_v5, %v1415_v7  ;;  %v1424_v18 = vcombine.high %v1399_v5, %v1415_v7  ;;  %v1406_v30 = vrot.slane %v1392_v21, %v4851_v40  ;;  %v1422_v31 = vrot.slane %v1408_v24, %v4851_v40 }
 0x3c7   : > { %v1107_v15 = vrot.slane %v1099_v1, %v4851_v40  ;;  %v1123_v16 = vrot.slane %v1115_v2, %v4851_v40  ;;  %v1338_v34 = vrot.slane %v1324_v27, %v4851_v40  ;;  %v1354_v35 = vrot.slane %v1340_v28, %v4851_v40 }
 0x3c8   : > { %v1723_v12 = vpack.c.bf16 %v1423_v11, %v1355_v10  ;;  %v1724_v29 = vpack.c.bf16 %v1424_v18, %v1356_v26  ;;  %v1425_v37 = vcombine.low %v1406_v30, %v1422_v31  ;;  %v1100_v8 = vcombine.high %v1074_v57, %v1082_v58 }
 0x3c9   : > { %v1131_v25 = vcombine.low %v1107_v15, %v1123_v16  ;;  %v1116_v9 = vcombine.high %v1090_v59, %v1098_v60  ;;  %v1132_v13 = vcombine.high %v1107_v15, %v1123_v16  ;;  %v1357_v14 = vcombine.low %v1338_v34, %v1354_v35  ;;  %v1436_v15 = vpop.permute.xlu1 %1435 }
 0x3ca   : > { %v1732_v17 = vsel %vm1727_vm1, %v1723_v12, 0  ;;  %v1778_v36 = vsel %vm1727_vm1, %v1724_v29, 0  ;;  %v1114_v41 = vrot.slane %v1100_v8, %v4851_v40  ;;  %v1426_v44 = vcombine.high %v1406_v30, %v1422_v31 }
 0x3cb   : > { %3535 = vmatpush3.bf16.xpose.msra.mxu1 %v1732_v17  ;;  %v1719_v19 = vpack.c.bf16 %v1131_v25, %v1131_v25  ;;  %v1725_v38 = vpack.c.bf16 %v1425_v37, %v1357_v14  ;;  %v1720_v39 = vpack.c.bf16 %v1132_v13, %v1132_v13  ;;  %v1130_v42 = vrot.slane %v1116_v9, %v4851_v40  ;;  %v1430_v17 = vpop.permute.xlu0 %1429 }
 0x3cc   : > { %3540 = vmatprep.subr.bf16.mxu1 %v4288_v6  ;;  %v1358_v46 = vcombine.high %v1338_v34, %v1354_v35  ;;  %v1447_v24 = vcombine.low %v4833_v22, %v1436_v15  ;;  %v1448_v25 = vcombine.high %v4833_v22, %v1436_v15 }
 0x3cd   : > { %v1824_v43 = vsel %vm1727_vm1, %v1725_v38, 0  ;;  %v1133_v45 = vcombine.low %v1114_v41, %v1130_v42  ;;  %v1134_v50 = vcombine.high %v1114_v41, %v1130_v42  ;;  %v1432_v16 = vpop.permute.xlu1 %1431 }
 0x3ce   : > { %v1726_v47 = vpack.c.bf16 %v1426_v44, %v1358_v46  ;;  %v1455_v31 = vrot.slane %v1447_v24, %v4848_v33 }
 0x3cf   : > { %v1721_v48 = vpack.c.bf16 %v1133_v45, %v1133_v45  ;;  %v1722_v51 = vpack.c.bf16 %v1134_v50, %v1134_v50  ;;  %v1438_v27 = vpop.permute.xlu0 %1437 }
 0x3d0   : > { %v1870_v49 = vsel %vm1727_vm1, %v1726_v47, 0 }
 0x3d2   : > { %3537 = vmatmul.mubr.msk.bf16.vlgmr.msra.gmra.mrb[4].mxu1 %vm1727_vm1, %v1719_v19  ;;  %v1462_v19 = vrot.slane %v1448_v25, %v4848_v33 }
 0x3d3   : > { %3541 = vmatpush3.bf16.xpose.msra.mxu1 %v1778_v36  ;;  %3542 = vmatprep.mubr.msk.bf16.mxu1 %vm4289_vm0, %v4288_v6 }
 0x3d4   : > { %3546 = vmatprep.subr.bf16.mxu1 %v4288_v6 }
 0x3da   : > { %3543 = vmatmul.mubr.msk.bf16.vlgmr.msra.gmra.mrb[8].mxu1 %vm1727_vm1, %v1720_v39 }
 0x3db   : > { %3547 = vmatpush3.bf16.xpose.msra.mxu1 %v1824_v43  ;;  %3548 = vmatprep.mubr.msk.bf16.mxu1 %vm4289_vm0, %v4288_v6  ;;  %v1516_v43 = vcombine.high %v4839_v23, %v1438_v27 }
 0x3dc   : > { %3552 = vmatprep.subr.bf16.mxu1 %v4288_v6 }
 0x3e2   : > { %3549 = vmatmul.mubr.msk.bf16.vlgmr.msra.gmra.mrb[12].mxu1 %vm1727_vm1, %v1721_v48 }
 0x3e3   : > { %3553 = vmatpush3.bf16.xpose.msra.mxu1 %v1870_v49  ;;  %3554 = vmatprep.mubr.msk.bf16.mxu1 %vm4289_vm0, %v4288_v6 }
 0x3e4   : > { %3564 = vmatprep.subr.bf16.mxu1 %v4288_v6 }
 0x3ea   : > { %3555 = vmatmul.mubr.msk.bf16.vlgmr.msra.gmra.mrb[16].mxu1 %vm1727_vm1, %v1722_v51 }
 0x3eb   : > { %3566 = vmatprep.mubr.msk.bf16.mxu1 %vm4289_vm0, %v4288_v6 }
 0x4a5   : > { %v1768_v52 = vpop.f32.mrb[4].mxu1 }
 0x4a6   : > { %v3538_v53 = vpop.f32.mrb[5].mxu1  ;;  %v1913_v54 = vsel %vm1912_vm2, %v1768_v52, -inf }
 0x4a7   : > { %1914 = vmax.xlane.f32.xlu1 %v1913_v54  ;;  %v1771_v55 = vpop.f32.mrb[6].mxu1  ;;  %v1530_v54 = vrot.slane %v1516_v43, %v4848_v33 }
 0x4a8   : > { %v3539_v56 = vpop.f32.mrb[7].mxu1 }
 0x4ad   : > { %v1814_v57 = vpop.f32.mrb[8].mxu1 }
 0x4ae   : > { %v3544_v58 = vpop.f32.mrb[9].mxu1  ;;  %v1916_v59 = vsel %vm1912_vm2, %v1814_v57, -inf }
 0x4af   : > { %1917 = vmax.xlane.f32.xlu0 %v1916_v59  ;;  %v1817_v60 = vpop.f32.mrb[10].mxu1 }
 0x4b0   : > { %v3545_v61 = vpop.f32.mrb[11].mxu1 }
 0x4b5   : > { %v4941_v62 = vpop.f32.mrb[12].mxu1 }
 0x4b6   : > { %v3550_v63 = vpop.f32.mrb[13].mxu1  ;;  %v1919_v11 = vsel %vm1912_vm2, %v4941_v62, -inf }
 0x4b7   : > { %v1863_v0 = vpop.f32.mrb[14].mxu1 }
 0x4b8   : > { %1441 = vrot.lane.b32.xlu1 %v4833_v22, %s4293_s17  ;;  %v3551_v1 = vpop.f32.mrb[15].mxu1  ;;  %v1515_v22 = vcombine.low %v4839_v23, %v1438_v27 }
 0x4ba   : > { %v1523_v53 = vrot.slane %v1515_v22, %v4848_v33 }
 0x4bd   : > { %v4945_v2 = vpop.f32.mrb[16].mxu1 }
 0x4be   : > { %v3556_v5 = vpop.f32.mrb[17].mxu1  ;;  %v1922_v12 = vsel %vm1912_vm2, %v4945_v2, -inf }
 0x4bf   : > { %v1909_v7 = vpop.f32.mrb[18].mxu1 }
 0x4c0   : > { %v3557_v10 = vpop.f32.mrb[19].mxu1 }
 0x4c5   : > { %1443 = vrot.lane.b32.xlu0 %v4839_v23, %s4293_s17 }
 0x4dc   : > { %1920 = vmax.xlane.f32.xlu1 %v1919_v11 }
 0x4e4   : > { %1923 = vmax.xlane.f32.xlu0 %v1922_v12 }
 0x534   : > { %v1915_v18 = vpop.xlane.xlu1 %1914 }
 0x535   : > { %v1925_v21 = vsub.f32 %v1768_v52, %v1915_v18 }
 0x537   : > { %v1929_v26 = vmul.f32 1.442695, %v1925_v21 }
 0x538   : > { %v1442_v28 = vpop.permute.xlu1 %1441 }
 0x539   : > { %3900 = vpow2.f32 %v1929_v26  ;;  %v1463_v29 = vcombine.low %v1430_v17, %v1442_v28  ;;  %v1464_v30 = vcombine.high %v1430_v17, %v1442_v28 }
 0x53b   : > { %v1471_v34 = vrot.slane %v1463_v29, %v4848_v33  ;;  %v1478_v35 = vrot.slane %v1464_v30, %v4848_v33 }
 0x53c   : > { %v1918_v36 = vpop.xlane.xlu0 %1917 }
 0x53d   : > { %v1479_v37 = vcombine.low %v1455_v31, %v1471_v34  ;;  %v1480_v8 = vcombine.high %v1455_v31, %v1471_v34  ;;  %v1495_v9 = vcombine.low %v1462_v19, %v1478_v35  ;;  %v1496_v13 = vcombine.high %v1462_v19, %v1478_v35 }
 0x53e   : > { %v1926_v14 = vsub.f32 %v1814_v57, %v1918_v36 }
 0x53f   : > { %v1487_v38 = vrot.slane %v1479_v37, %v4851_v40  ;;  %v1494_v39 = vrot.slane %v1480_v8, %v4851_v40  ;;  %v1503_v41 = vrot.slane %v1495_v9, %v4851_v40  ;;  %v1510_v42 = vrot.slane %v1496_v13, %v4851_v40 }
 0x540   : > { %v1931_v44 = vmul.f32 1.442695, %v1926_v14  ;;  %v1444_v45 = vpop.permute.xlu0 %1443 }
 0x541   : > { %v1583_v46 = vcombine.low %v1487_v38, %v1494_v39  ;;  %v3336_v47 = vcombine.high %v1487_v38, %v1494_v39  ;;  %v1599_v48 = vcombine.low %v1503_v41, %v1510_v42  ;;  %v3337_v49 = vcombine.high %v1503_v41, %v1510_v42 }
 0x542   : > { %3902 = vpow2.f32 %v1931_v44  ;;  %v1531_v50 = vcombine.low %v1432_v16, %v1444_v45  ;;  %v1532_v51 = vcombine.high %v1432_v16, %v1444_v45 }
 0x543   : > { %v4965_v52 = vpop.eup %3900  ;;  %v1590_v57 = vrot.slane %v1583_v46, %v4848_v33  ;;  %v1598_v58 = vrot.slane %v3336_v47, %v4848_v33  ;;  %v1606_v59 = vrot.slane %v1599_v48, %v4848_v33  ;;  %v1614_v60 = vrot.slane %v3337_v49, %v4848_v33 }
 0x544   : > { %v1539_v55 = vrot.slane %v1531_v50, %v4848_v33  ;;  %v1546_v56 = vrot.slane %v1532_v51, %v4848_v33  ;;  %v1937_v23 = vsel %vm1912_vm2, %v4965_v52, 0.0  ;;  %v1949_v51 = vpack.c.bf16 %v4965_v52, %v4965_v52 }
 0x545   : > { %1938 = vadd.xlane.f32.xlu0 %v1937_v23  ;;  %v1615_v12 = vcombine.low %v1590_v57, %v1598_v58  ;;  %v1631_v15 = vcombine.low %v1606_v59, %v1614_v60  ;;  %v1616_v24 = vcombine.high %v1590_v57, %v1598_v58  ;;  %v1632_v34 = vcombine.high %v1606_v59, %v1614_v60 }
 0x546   : > { %v1547_v61 = vcombine.low %v1523_v53, %v1539_v55  ;;  %v1548_v63 = vcombine.high %v1523_v53, %v1539_v55  ;;  %v1563_v0 = vcombine.low %v1530_v54, %v1546_v56  ;;  %v1564_v1 = vcombine.high %v1530_v54, %v1546_v56 }
 0x547   : > { %v1623_v31 = vrot.slane %v1615_v12, %v4851_v40  ;;  %v1639_v19 = vrot.slane %v1631_v15, %v4851_v40  ;;  %v1630_v38 = vrot.slane %v1616_v24, %v4851_v40  ;;  %v1646_v39 = vrot.slane %v1632_v34, %v4851_v40  ;;  %v3811_v12 = vld [vmem:[#allocation10 + $0x28] sm:$0xff]  }
 0x548   : > { %v1555_v5 = vrot.slane %v1547_v61, %v4851_v40  ;;  %v1562_v7 = vrot.slane %v1548_v63, %v4851_v40  ;;  %v1571_v10 = vrot.slane %v1563_v0, %v4851_v40  ;;  %v1578_v11 = vrot.slane %v1564_v1, %v4851_v40 }
 0x549   : > { %v1647_v41 = vcombine.low %v1623_v31, %v1639_v19  ;;  %v1648_v43 = vcombine.high %v1623_v31, %v1639_v19  ;;  %v1649_v49 = vcombine.low %v1630_v38, %v1646_v39  ;;  %v1650_v50 = vcombine.high %v1630_v38, %v1646_v39 }
 0x54a   : > { %v1651_v16 = vcombine.low %v1555_v5, %v1562_v7  ;;  %v3338_v17 = vcombine.high %v1555_v5, %v1562_v7  ;;  %v1667_v18 = vcombine.low %v1571_v10, %v1578_v11  ;;  %v3339_v21 = vcombine.high %v1571_v10, %v1578_v11  ;;  %v3807_v5 = vld [vmem:[#allocation10 + $0x8] sm:$0xff]   ;;  %v3808_v7 = vld [vmem:[#allocation10 + $0x10] sm:$0xff]   ;;  %v3809_v10 = vld [vmem:[#allocation10 + $0x18] sm:$0xff]  }
 0x54b   : > { %v3810_v11 = vld [vmem:[#allocation10 + $0x20] sm:$0xff]  }
 0x54c   : > { %v3903_v25 = vpop.eup %3902  ;;  %v1658_v26 = vrot.slane %v1651_v16, %v4848_v33  ;;  %v1666_v27 = vrot.slane %v3338_v17, %v4848_v33  ;;  %v1674_v28 = vrot.slane %v1667_v18, %v4848_v33  ;;  %v1682_v29 = vrot.slane %v3339_v21, %v4848_v33 }
 0x54d   : > { %v1940_v30 = vsel %vm1912_vm2, %v3903_v25, 0.0  ;;  %v1950_v53 = vpack.c.bf16 %v3903_v25, %v3903_v25 }
 0x54e   : > { %1941 = vadd.xlane.f32.xlu0 %v1940_v30  ;;  %v1683_v35 = vcombine.low %v1658_v26, %v1666_v27  ;;  %v1699_v36 = vcombine.low %v1674_v28, %v1682_v29  ;;  %v1684_v37 = vcombine.high %v1658_v26, %v1666_v27  ;;  %v1700_v8 = vcombine.high %v1674_v28, %v1682_v29 }
 0x550   : > { %v1691_v9 = vrot.slane %v1683_v35, %v4851_v40  ;;  %v1707_v13 = vrot.slane %v1699_v36, %v4851_v40  ;;  %v1698_v22 = vrot.slane %v1684_v37, %v4851_v40  ;;  %v1714_v14 = vrot.slane %v1700_v8, %v4851_v40 }
 0x552   : > { %v1715_v42 = vcombine.low %v1691_v9, %v1707_v13  ;;  %v1716_v44 = vcombine.high %v1691_v9, %v1707_v13  ;;  %v1717_v47 = vcombine.low %v1698_v22, %v1714_v14  ;;  %v1718_v48 = vcombine.high %v1698_v22, %v1714_v14 }
 0x554   : > { %v1953_v45 = vpack.c.bf16 %v1715_v42, %v1647_v41  ;;  %v1954_v46 = vpack.c.bf16 %v1716_v44, %v1648_v43  ;;  %v1955_v54 = vpack.c.bf16 %v1717_v47, %v1649_v49  ;;  %v1956_v55 = vpack.c.bf16 %v1718_v48, %v1650_v50 }
 0x556   : > { %3559 = vmatpush3.bf16.msra.mxu0 %v1953_v45  ;;  %3565 = vmatpush3.bf16.msra.mxu1 %v1954_v46 }
 0x557   : > { %3570 = vmatprep.subr.bf16.mxu0 %v4288_v6  ;;  %3576 = vmatprep.subr.bf16.mxu1 %v4288_v6 }
 0x559   : > { %3561 = vmatmul.mubr.msk.bf16.vlgmr.msra.gmra.mrb[4].mxu0 %vm1912_vm2, %v1949_v51  ;;  %3567 = vmatmul.mubr.msk.bf16.vlgmr.msra.gmra.mrb[20].mxu1 %vm1912_vm2, %v1950_v53 }
 0x55a   : > { %3571 = vmatpush3.bf16.msra.mxu0 %v1955_v54  ;;  %3577 = vmatpush3.bf16.msra.mxu1 %v1956_v55 }
 0x55b   : > { %3572 = vmatprep.mubr.msk.bf16.mxu0 %vm4289_vm0, %v4288_v6  ;;  %3578 = vmatprep.mubr.msk.bf16.mxu1 %vm4289_vm0, %v4288_v6 }
 0x55c   : > { %3582 = vmatprep.subr.bf16.mxu0 %v4288_v6 }
 0x569   : > { %v1921_v52 = vpop.xlane.xlu1 %1920 }
 0x56a   : > { %v1927_v56 = vsub.f32 %v4941_v62, %v1921_v52 }
 0x56c   : > { %v1933_v23 = vmul.f32 1.442695, %v1927_v56  ;;  %v3812_v56 = vld [vmem:[#allocation10 + $0x30] sm:$0xff]  }
 0x56e   : > { %3904 = vpow2.f32 %v1933_v23 }
 0x571   : > { %v1924_v57 = vpop.xlane.xlu0 %1923 }
 0x572   : > { %v1928_v58 = vsub.f32 %v4945_v2, %v1924_v57  ;;  %v3806_v2 = vld [vmem:[#allocation10] sm:$0xff]  }
 0x574   : > { %v1935_v59 = vmul.f32 1.442695, %v1928_v58 }
 0x576   : > { %3906 = vpow2.f32 %v1935_v59 }
 0x578   : > { %v3905_v60 = vpop.eup %3904 }
 0x579   : > { %v1943_v61 = vsel %vm1912_vm2, %v3905_v60, 0.0  ;;  %v1951_v63 = vpack.c.bf16 %v3905_v60, %v3905_v60 }
 0x57a   : > { %1944 = vadd.xlane.f32.xlu1 %v1943_v61 }
 0x57b   : > { %3573 = vmatmul.mubr.msk.bf16.vlgmr.msra.gmra.mrb[8].mxu0 %vm1912_vm2, %v1951_v63 }
 0x57c   : > { %3598 = vmatprep.mubr.msk.bf16.mxu0 %vm4289_vm0, %v4288_v6  ;;  %3583 = vmatpush3.bf16.msra.mxu0 %v3806_v2 }
 0x57d   : > { %3584 = vmatprep.subr.bf16.mxu0 %v4288_v6 }
 0x580   : > { %v3907_v0 = vpop.eup %3906  ;;  %3585 = vmatpush3.bf16.msra.mxu0 %v3807_v5 }
 0x581   : > { %v1946_v62 = vsel %vm1912_vm2, %v3907_v0, 0.0  ;;  %v1952_v1 = vpack.c.bf16 %v3907_v0, %v3907_v0  ;;  %3586 = vmatprep.subr.bf16.mxu0 %v4288_v6 }
 0x582   : > { %1947 = vadd.xlane.f32.xlu0 %v1946_v62 }
 0x583   : > { %3579 = vmatmul.mubr.msk.bf16.vlgmr.msra.gmra.mrb[24].mxu1 %vm1912_vm2, %v1952_v1 }
 0x584   : > { %2677 = vmatprep.mubr.bf16.mxu1 %v4290_v32  ;;  %3587 = vmatpush3.bf16.msra.mxu0 %v3808_v7  ;;  %v3813_v7 = vld [vmem:[#allocation10 + $0x38] sm:$0xff]  }
 0x585   : > { %3588 = vmatprep.subr.bf16.mxu0 %v4288_v6 }
 0x588   : > { %3589 = vmatpush3.bf16.msra.mxu0 %v3809_v10 }
 0x589   : > { %3590 = vmatprep.subr.bf16.mxu0 %v4288_v6 }
 0x58c   : > { %3591 = vmatpush3.bf16.msra.mxu0 %v3810_v11 }
 0x58d   : > { %3592 = vmatprep.subr.bf16.mxu0 %v4288_v6 }
 0x590   : > { %3593 = vmatpush3.bf16.msra.mxu0 %v3811_v12 }
 0x591   : > { %3594 = vmatprep.subr.bf16.mxu0 %v4288_v6 }
 0x594   : > { %3595 = vmatpush3.bf16.msra.mxu0 %v3812_v56  ;;  %v3838_v56 = vld [vmem:[#allocation11 + $0x80] ss:$16 sps:$4 sm:$0xff]  }
 0x595   : > { %3596 = vmatprep.subr.bf16.mxu0 %v4288_v6 }
 0x598   : > { %3597 = vmatpush3.bf16.msra.mxu0 %v3813_v7  ;;  %v3861_v7 = vld [vmem:[#allocation11 + $0xec] ss:$16 sps:$4 sm:$0xff]  }
 0x5d2   : > { %v1939_v27 = vpop.xlane.xlu0 %1938 }
 0x5d3   : > { %3908 = vrcp.f32 %v1939_v27 }
 0x5db   : > { %v1942_v29 = vpop.xlane.xlu0 %1941 }
 0x5dd   : > { %v3909_v31 = vpop.eup %3908 }
 0x607   : > { %v1945_v28 = vpop.xlane.xlu1 %1944 }
 0x608   : > { %3910 = vrcp.f32 %v1945_v28 }
 0x609   : > { %3912 = vrcp.f32 %v1942_v29 }
 0x60f   : > { %v1948_v30 = vpop.xlane.xlu0 %1947 }
 0x610   : > { %3914 = vrcp.f32 %v1948_v30 }
 0x612   : > { %v3911_v19 = vpop.eup %3910 }
 0x613   : > { %v3913_v14 = vpop.eup %3912 }
 0x61a   : > { %v3915_v38 = vpop.eup %3914 }
 0x62c   : > { %v1994_v15 = vpop.f32.mrb[4].mxu0  ;;  %v2037_v16 = vpop.f32.mrb[20].mxu1 }
 0x62d   : > { %v3562_v17 = vpop.f32.mrb[5].mxu0  ;;  %v3568_v18 = vpop.f32.mrb[21].mxu1  ;;  %v2133_v35 = vmul.f32 %v3909_v31, %v1994_v15  ;;  %v2134_v41 = vmul.f32 %v3913_v14, %v2037_v16  ;;  %v3816_v14 = vld [vmem:[#allocation11 + $0x4] ss:$16 sps:$4 sm:$0xff]  }
 0x62e   : > { %v1997_v21 = vpop.f32.mrb[6].mxu0  ;;  %v2040_v24 = vpop.f32.mrb[22].mxu1  ;;  %2645 = vmatprep.subr.bf16.mxu1 %v3816_v14  ;;  %v3877_v14 = vld [vmem:[#allocation13 + $0x98] sm:$0xff]  }
 0x62f   : > { %v3563_v25 = vpop.f32.mrb[7].mxu0  ;;  %v3569_v26 = vpop.f32.mrb[23].mxu1 }
 0x64e   : > { %v2080_v34 = vpop.f32.mrb[8].mxu0 }
 0x64f   : > { %v2135_v36 = vmul.f32 %v3911_v19, %v2080_v34  ;;  %v3574_v37 = vpop.f32.mrb[9].mxu0  ;;  %v3350_v19 = vld [vmem:[%s5233_s15] ss:$0 sm:$0xff]  ;;  %s5239_s15 = sld [smem:[#allocation40_spill]] }
 0x650   : > { %v2083_v8 = vpop.f32.mrb[10].mxu0 }
 0x651   : > { %v2137_v9 = vcombine.low %v2133_v35, %v2135_v36  ;;  %v2138_v13 = vcombine.high %v2133_v35, %v2135_v36  ;;  %v3575_v22 = vpop.f32.mrb[11].mxu0  ;;  %v3934_v8 = vld [vmem:[%s4744_s5] sm:$0xff] }
 0x652   : > { %v3814_v22 = vld [vmem:[#allocation11] ss:$16 sps:$4 sm:$0xff]  }
 0x653   : > { %v2145_v48 = vrot.slane %v2137_v9, %v4848_v33  ;;  %v2152_v49 = vrot.slane %v2138_v13, %v4848_v33  ;;  %2646 = vmatpush1.bf16.msra.mxu1 %v3814_v22  ;;  %v3876_v22 = vld [vmem:[#allocation13 + $0x18] sm:$0xff]  }
 0x656   : > { %v2123_v39 = vpop.f32.mrb[24].mxu1 }
 0x657   : > { %v2136_v42 = vmul.f32 %v3915_v38, %v2123_v39  ;;  %v3580_v43 = vpop.f32.mrb[25].mxu1  ;;  %v3817_v38 = vld [vmem:[#allocation11 + $0x8] ss:$16 sps:$4 sm:$0xff]   ;;  %v3819_v39 = vld [vmem:[#allocation11 + $0xc] ss:$16 sps:$4 sm:$0xff]  }
 0x658   : > { %v2126_v44 = vpop.f32.mrb[26].mxu1  ;;  %2686 = vmatprep.subr.bf16.mxu0 %v3819_v39  ;;  %v3823_v43 = vld [vmem:[#allocation11 + $0x28] ss:$16 sps:$4 sm:$0xff]   ;;  %v3879_v39 = vld [vmem:[#allocation13 + $0xe0] sm:$0xff]  }
 0x659   : > { %v2153_v45 = vcombine.low %v2134_v41, %v2136_v42  ;;  %v2154_v46 = vcombine.high %v2134_v41, %v2136_v42  ;;  %v3581_v47 = vpop.f32.mrb[27].mxu1  ;;  %v3822_v41 = vld [vmem:[#allocation11 + $0x24] ss:$16 sps:$4 sm:$0xff]   ;;  %v3820_v42 = vld [vmem:[#allocation11 + $0x20] ss:$16 sps:$4 sm:$0xff]  }
 0x65a   : > { %2647 = vmatprep.subr.bf16.mxu1 %v3822_v41  ;;  %v3828_v44 = vld [vmem:[#allocation11 + $0x44] ss:$16 sps:$4 sm:$0xff]   ;;  %v3829_v47 = vld [vmem:[#allocation11 + $0x48] ss:$16 sps:$4 sm:$0xff]  }
 0x65b   : > { %v2161_v50 = vrot.slane %v2153_v45, %v4848_v33  ;;  %v2168_v51 = vrot.slane %v2154_v46, %v4848_v33  ;;  %v3831_v45 = vld [vmem:[#allocation11 + $0x4c] ss:$16 sps:$4 sm:$0xff]   ;;  %2648 = vmatpush1.bf16.msra.mxu1 %v3820_v42  ;;  %v3826_v46 = vld [vmem:[#allocation11 + $0x40] ss:$16 sps:$4 sm:$0xff]  }
 0x65c   : > { %2649 = vmatprep.subr.bf16.mxu1 %v3828_v44  ;;  %v3880_v41 = vld [vmem:[#allocation13 + $0x20] sm:$0xff]   ;;  %v3882_v42 = vld [vmem:[#allocation13 + $0x68] sm:$0xff]  }
 0x65d   : > { %v2169_v53 = vcombine.low %v2145_v48, %v2161_v50  ;;  %v2170_v54 = vcombine.high %v2145_v48, %v2161_v50  ;;  %v2185_v55 = vcombine.low %v2152_v49, %v2168_v51  ;;  %v2186_v52 = vcombine.high %v2152_v49, %v2168_v51  ;;  %v3884_v44 = vld [vmem:[#allocation13 + $0x28] sm:$0xff]  }
 0x65f   : > { %v2177_v23 = vrot.slane %v2169_v53, %v4851_v40  ;;  %v2184_v57 = vrot.slane %v2170_v54, %v4851_v40  ;;  %v2193_v58 = vrot.slane %v2185_v55, %v4851_v40  ;;  %v2200_v59 = vrot.slane %v2186_v52, %v4851_v40  ;;  %2650 = vmatpush1.bf16.msra.mxu1 %v3826_v46  ;;  %v3834_v53 = vld [vmem:[#allocation11 + $0x64] ss:$16 sps:$4 sm:$0xff]   ;;  %v3837_v54 = vld [vmem:[#allocation11 + $0x6c] ss:$16 sps:$4 sm:$0xff]   ;;  %v3832_v55 = vld [vmem:[#allocation11 + $0x60] ss:$16 sps:$4 sm:$0xff]  }
 0x660   : > { %v3835_v52 = vld [vmem:[#allocation11 + $0x68] ss:$16 sps:$4 sm:$0xff]   ;;  %2651 = vmatprep.subr.bf16.mxu1 %v3834_v53  ;;  %v3886_v46 = vld [vmem:[#allocation13 + $0x70] sm:$0xff]  }
 0x661   : > { %v2205_v60 = vcombine.low %v2177_v23, %v2184_v57  ;;  %v3348_v61 = vcombine.high %v2177_v23, %v2184_v57  ;;  %v2221_v63 = vcombine.low %v2193_v58, %v2200_v59  ;;  %v3349_v0 = vcombine.high %v2193_v58, %v2200_v59  ;;  %v3840_v23 = vld [vmem:[#allocation11 + $0x84] ss:$16 sps:$4 sm:$0xff]   ;;  %v3841_v57 = vld [vmem:[#allocation11 + $0x88] ss:$16 sps:$4 sm:$0xff]   ;;  %v3843_v58 = vld [vmem:[#allocation11 + $0x8c] ss:$16 sps:$4 sm:$0xff]  }
 0x662   : > { %v3846_v59 = vld [vmem:[#allocation11 + $0xa4] ss:$16 sps:$4 sm:$0xff]   ;;  %v3892_v53 = vld [vmem:[#allocation13 + $0x38] sm:$0xff]  }
 0x663   : > { %v2212_v62 = vrot.slane %v2205_v60, %v4848_v33  ;;  %v2220_v1 = vrot.slane %v3348_v61, %v4848_v33  ;;  %v2228_v2 = vrot.slane %v2221_v63, %v4848_v33  ;;  %v2236_v5 = vrot.slane %v3349_v0, %v4848_v33  ;;  %2652 = vmatpush1.bf16.msra.mxu1 %v3832_v55  ;;  %v3849_v60 = vld [vmem:[#allocation11 + $0xac] ss:$16 sps:$4 sm:$0xff]   ;;  %v3844_v61 = vld [vmem:[#allocation11 + $0xa0] ss:$16 sps:$4 sm:$0xff]   ;;  %v3847_v63 = vld [vmem:[#allocation11 + $0xa8] ss:$16 sps:$4 sm:$0xff]  }
 0x664   : > { %2653 = vmatprep.subr.bf16.mxu1 %v3840_v23  ;;  %v3852_v0 = vld [vmem:[#allocation11 + $0xc4] ss:$16 sps:$4 sm:$0xff]   ;;  %v2475_v55 = vsub.s32 2, %v4807_v3 }
 0x665   : > { %v2238_v10 = vcombine.high %v2212_v62, %v2220_v1  ;;  %v2254_v11 = vcombine.high %v2228_v2, %v2236_v5  ;;  %v2237_v12 = vcombine.low %v2212_v62, %v2220_v1  ;;  %v2253_v15 = vcombine.low %v2228_v2, %v2236_v5  ;;  %v3855_v62 = vld [vmem:[#allocation11 + $0xcc] ss:$16 sps:$4 sm:$0xff]   ;;  %v3850_v1 = vld [vmem:[#allocation11 + $0xc0] ss:$16 sps:$4 sm:$0xff]   ;;  %v3853_v2 = vld [vmem:[#allocation11 + $0xc8] ss:$16 sps:$4 sm:$0xff]  }
 0x666   : > { %v3858_v5 = vld [vmem:[#allocation11 + $0xe4] ss:$16 sps:$4 sm:$0xff]  }
 0x667   : > { %v2252_v16 = vrot.slane %v2238_v10, %v4851_v40  ;;  %v2268_v17 = vrot.slane %v2254_v11, %v4851_v40  ;;  %v2245_v6 = vrot.slane %v2237_v12, %v4851_v40  ;;  %v2261_v18 = vrot.slane %v2253_v15, %v4851_v40  ;;  %2654 = vmatpush1.bf16.msra.mxu1 %v3838_v56  ;;  %v3856_v10 = vld [vmem:[#allocation11 + $0xe0] ss:$16 sps:$4 sm:$0xff]   ;;  %v3859_v11 = vld [vmem:[#allocation11 + $0xe8] ss:$16 sps:$4 sm:$0xff]  }
 0x668   : > { %2655 = vmatprep.subr.bf16.mxu1 %v3846_v59  ;;  %v2479_v56 = vsub.s32 3, %v4807_v3 }
 0x669   : > { %v2271_v21 = vcombine.low %v2252_v16, %v2268_v17  ;;  %v2270_v24 = vcombine.high %v2245_v6, %v2261_v18  ;;  %v2272_v25 = vcombine.high %v2252_v16, %v2268_v17  ;;  %v2269_v26 = vcombine.low %v2245_v6, %v2261_v18  ;;  %v3359_v6 = vld [vmem:[%s5234_s12] ss:$0 sm:$0xff]  ;;  %s666_s12 = scalar_lea.vmem [#allocation14], %s3295_s3  ;;  %s4296_s3 = smov [#allocation14]  }
 0x66a   : > { %s3124_s2 = sshll.u32 %s666_s12, 4  ;;  %s5078_s2 = int_to_ptr.vmem [resolvable:$true] %s3124_s2 }
 0x66b   : > { %2278 = vrot.lane.b32.xlu0 %v2271_v21, %s4291_s11  ;;  %2274 = vrot.lane.b32.xlu1 %v2270_v24, %s4293_s17  ;;  %v3360_v21 = vld [vmem:[%s5235_s9] ss:$0 sm:$0xff]  ;;  %s3431_s17 = sshll.u32 %s5237_s8, 1  ;;  %s5240_s11 = sld [smem:[#allocation41_spill]] }
 0x66c   : > { %2656 = vmatpush1.bf16.msra.mxu1 %v3844_v61  ;;  %s3120_s5 = sadd.s32 %s5238_s4, %s3431_s17  ;;  %s4135_s8 = scalar_lea.vmem %s5078_s2, 128 }
 0x66d   : > { %2657 = vmatprep.subr.bf16.mxu1 %v3852_v0  ;;  %s3432_s14 = sshll.u32 %s3120_s5, 7  ;;  %p4136_p6 = scmp.ne.s32.totalorder %s5078_s2, %s4135_s8 }
 0x66e   : > { %s4139_s4 = sshll.u32 %s4296_s3, 4  ;;  %s4140_s4 = int_to_ptr.vmem [resolvable:$false] %s4139_s4 }
 0x66f   : > { %2282 = vrot.lane.b32.xlu1 %v2272_v25, %s4292_s21  ;;  %p4137_p10 = pnand %p4136_p6, %p5241_p11  ;;  %s4141_s17 = scalar_lea.vmem %s4140_s4, 256 }
 0x670   : > { %2658 = vmatpush1.bf16.msra.mxu1 %v3850_v1  ;;  %p4142_p2 = scmp.lt.s32.totalorder %s5078_s2, %s4140_s4  ;;  %p4143_p7 = scmp.lt.s32.totalorder %s4141_s17, %s4135_s8 }
 0x671   : > { %2659 = vmatprep.subr.bf16.mxu1 %v3858_v5  ;;  %s5076_s21 = scalar_lea.hbm %s5240_s11, %s3432_s14  ;;  %p4138_p1 = pneg %p4137_p10 }
 0x672   : > { %p4144_p13 = por %p4143_p7, %p4142_p2 }
 0x674   : > { %2660 = vmatpush1.bf16.msra.mxu1 %v3856_v10  ;;  %p4145_p8 = pnand %p4144_p13, %p4138_p1 }
 0x6dd   : > { %v2275_v33 = vpop.permute.xlu1 %2274  ;;  %v2279_v27 = vpop.permute.xlu0 %2278 }
 0x6de   : > { %v2285_v28 = vsel %vm1727_vm1, %v2269_v26, %v2275_v33  ;;  %v3862_v33 = vld [vmem:[#allocation13 + $0x40] sm:$0xff]  }
 0x6df   : > { %v2287_v30 = vsel %vm2286_vm3, %v2285_v28, %v2279_v27  ;;  %v3863_v27 = vld [vmem:[#allocation13 + $0xc0] sm:$0xff]   ;;  %3470 = vmatprep.subr.bf16.mxu1 %v3862_v33 }
 0x6e0   : > { %v3864_v28 = vld [vmem:[#allocation13] sm:$0xff]  }
 0x6e1   : > { %v2283_v29 = vpop.permute.xlu1 %2282 }
 0x6e2   : > { %v2289_v40 = vsel %vm2288_vm4, %v2287_v30, %v2283_v29  ;;  %v3865_v29 = vld [vmem:[#allocation13 + $0x80] sm:$0xff]   ;;  %v3866_v30 = vld [vmem:[#allocation13 + $0x48] sm:$0xff]  }
 0x6e3   : > { %v2290_v31 = vpack.c.bf16 %v2289_v40, %v2289_v40  ;;  %v3867_v40 = vld [vmem:[#allocation13 + $0xc8] sm:$0xff]  }
 0x6e5   : > { %3599 = vmatmul.mubr.bf16.vlgmr.msra.gmra.mrb[12].mxu0 %v2290_v31  ;;  %v3868_v31 = vld [vmem:[#allocation13 + $0x8] sm:$0xff]  }
 0x6e6   : > { %2718 = vmatprep.mubr.bf16.mxu0 %v4290_v32  ;;  %v3825_v32 = vld [vmem:[#allocation11 + $0x2c] ss:$16 sps:$4 sm:$0xff]   ;;  %2687 = vmatpush1.bf16.msra.mxu0 %v3817_v38  ;;  %v3878_v38 = vld [vmem:[#allocation13 + $0x60] sm:$0xff]  }
 0x6e7   : > { %2688 = vmatprep.subr.bf16.mxu0 %v3825_v32  ;;  %v3881_v32 = vld [vmem:[#allocation13 + $0xa0] sm:$0xff]  }
 0x6ea   : > { %2689 = vmatpush1.bf16.msra.mxu0 %v3823_v43  ;;  %v3883_v43 = vld [vmem:[#allocation13 + $0xe8] sm:$0xff]  }
 0x6eb   : > { %2690 = vmatprep.subr.bf16.mxu0 %v3831_v45  ;;  %v3885_v45 = vld [vmem:[#allocation13 + $0xa8] sm:$0xff]  }
 0x6ee   : > { %2691 = vmatpush1.bf16.msra.mxu0 %v3829_v47  ;;  %v3887_v47 = vld [vmem:[#allocation13 + $0xf0] sm:$0xff]  }
 0x6ef   : > { %2692 = vmatprep.subr.bf16.mxu0 %v3837_v54  ;;  %v3893_v54 = vld [vmem:[#allocation13 + $0xb8] sm:$0xff]  }
 0x6f2   : > { %2693 = vmatpush1.bf16.msra.mxu0 %v3835_v52  ;;  %v2463_v52 = vld [vmem:[%s5236_s16] sm:$0xf]  ;;  %s3109_s16 = scalar_lea.sflag [#allocation4], %s4738_s1 }
 0x6f3   : > { %2694 = vmatprep.subr.bf16.mxu0 %v3843_v58  ;;  %v2468_v23 = vrot.slane %v2463_v52, %v858_v4  ;;  %v2472_v58 = vrot.slane %v2463_v52, %v862_v20  ;;  %v2480_v59 = vrot.slane %v2463_v52, %v2479_v56 }
 0x6f6   : > { %2695 = vmatpush1.bf16.msra.mxu0 %v3841_v57  ;;  %v2476_v57 = vrot.slane %v2463_v52, %v2475_v55 }
 0x6f7   : > { %2696 = vmatprep.subr.bf16.mxu0 %v3849_v60 }
 0x6fa   : > { %2697 = vmatpush1.bf16.msra.mxu0 %v3847_v63 }
 0x6fb   : > { %2698 = vmatprep.subr.bf16.mxu0 %v3855_v62 }
 0x6fe   : > { %2699 = vmatpush1.bf16.msra.mxu0 %v3853_v2 }
 0x6ff   : > { %2700 = vmatprep.subr.bf16.mxu0 %v3861_v7 }
 0x702   : > { %2701 = vmatpush1.bf16.msra.mxu0 %v3859_v11 }
 0x703   : > { %3492 = vmatprep.subr.bf16.mxu0 %v3863_v27 }
 0x7b8   : > { %v2396_v34 = vpop.f32.mrb[12].mxu0 }
 0x7b9   : > { %v2397_v35 = vadd.f32 %v3350_v19, %v2396_v34  ;;  %v3600_v36 = vpop.f32.mrb[13].mxu0  ;;  %v3869_v19 = vld [vmem:[#allocation13 + $0x88] sm:$0xff]   ;;  %v3870_v34 = vld [vmem:[#allocation13 + $0x50] sm:$0xff]  }
 0x7ba   : > { %v2399_v37 = vpop.f32.mrb[14].mxu0  ;;  %v3872_v36 = vld [vmem:[#allocation13 + $0x10] sm:$0xff]  }
 0x7bb   : > { %v5046_v9 = vadd.f32 %v3934_v8, %v2397_v35  ;;  %v3601_v13 = vpop.f32.mrb[15].mxu0  ;;  %v3871_v35 = vld [vmem:[#allocation13 + $0xd0] sm:$0xff]   ;;  %v3874_v8 = vld [vmem:[#allocation13 + $0x58] sm:$0xff]  }
 0x7bc   : > { %v3873_v37 = vld [vmem:[#allocation13 + $0x90] sm:$0xff]   ;;  %v3875_v13 = vld [vmem:[#allocation13 + $0xd8] sm:$0xff]  }
 0x7bd   : > { %2405 = vadd.xlane.f32.xlu1 %v5046_v9 }
 0x84a   : > { %v2406_v48 = vpop.xlane.xlu1 %2405 }
 0x84b   : > { %v2407_v49 = vmul.f32 0.0078125, %v2406_v48  ;;  %v3888_v48 = vld [vmem:[#allocation13 + $0x30] sm:$0xff]  }
 0x84d   : > { %v2408_v50 = vsub.f32 %v5046_v9, %v2407_v49  ;;  %v3889_v49 = vld [vmem:[#allocation13 + $0xb0] sm:$0xff]  }
 0x84f   : > { %v2409_v51 = vmul.f32 %v2408_v50, %v2408_v50 }
 0x851   : > { %2410 = vadd.xlane.f32.xlu0 %v2409_v51  ;;  %v3891_v51 = vld [vmem:[#allocation13 + $0xf8] sm:$0xff]  }
 0x8de   : > { %v2411_v12 = vpop.xlane.xlu0 %2410 }
 0x8df   : > { %v2412_v15 = vmul.f32 0.0078125, %v2411_v12 }
 0x8e1   : > { %v2413_v16 = vadd.f32 1e-05, %v2412_v15 }
 0x8e3   : > { %3916 = vrsqrt.f32 %v2413_v16 }
 0x8ed   : > { %v3917_v17 = vpop.eup %3916 }
 0x8ee   : > { %v2415_v18 = vmul.f32 %v3917_v17, %v2408_v50  ;;  %v3890_v50 = vld [vmem:[#allocation13 + $0x78] sm:$0xff]  }
 0x8f0   : > { %v2422_v24 = vmul.f32 %v3359_v6, %v2415_v18 }
 0x8f2   : > { %v2429_v25 = vadd.f32 %v3360_v21, %v2422_v24 }
 0x8f4   : > { %v2430_v26 = vpack.c.bf16 %v2429_v25, %v2429_v25 }
 0x8f6   : > { %2678 = vmatmul.mubr.bf16.vlgmr.msra.gmra.mrb[28].mxu1 %v2430_v26  ;;  %2719 = vmatmul.mubr.bf16.vlgmr.msra.gmra.mrb[16].mxu0 %v2430_v26 }
 0x8f7   : > { %3471 = vmatpush3.bf16.msra.mxu1 %v3864_v28  ;;  %3493 = vmatpush3.bf16.msra.mxu0 %v3865_v29 }
 0x8f8   : > { %3472 = vmatprep.subr.bf16.mxu1 %v3866_v30  ;;  %3494 = vmatprep.subr.bf16.mxu0 %v3867_v40 }
 0x8fb   : > { %3473 = vmatpush3.bf16.msra.mxu1 %v3868_v31  ;;  %3495 = vmatpush3.bf16.msra.mxu0 %v3869_v19 }
 0x8fc   : > { %3474 = vmatprep.subr.bf16.mxu1 %v3870_v34  ;;  %3496 = vmatprep.subr.bf16.mxu0 %v3871_v35 }
 0x8ff   : > { %3475 = vmatpush3.bf16.msra.mxu1 %v3872_v36  ;;  %3497 = vmatpush3.bf16.msra.mxu0 %v3873_v37 }
 0x900   : > { %3476 = vmatprep.subr.bf16.mxu1 %v3874_v8  ;;  %3498 = vmatprep.subr.bf16.mxu0 %v3875_v13 }
 0x903   : > { %3477 = vmatpush3.bf16.msra.mxu1 %v3876_v22  ;;  %3499 = vmatpush3.bf16.msra.mxu0 %v3877_v14 }
 0x904   : > { %3478 = vmatprep.subr.bf16.mxu1 %v3878_v38  ;;  %3500 = vmatprep.subr.bf16.mxu0 %v3879_v39 }
 0x907   : > { %3479 = vmatpush3.bf16.msra.mxu1 %v3880_v41  ;;  %3501 = vmatpush3.bf16.msra.mxu0 %v3881_v32  ;;  %v3397_v41 = vld [vmem:[%s5239_s15] ss:$0 sm:$0xff] }
 0x908   : > { %3480 = vmatprep.subr.bf16.mxu1 %v3882_v42  ;;  %3502 = vmatprep.subr.bf16.mxu0 %v3883_v43 }
 0x90b   : > { %3481 = vmatpush3.bf16.msra.mxu1 %v3884_v44  ;;  %3503 = vmatpush3.bf16.msra.mxu0 %v3885_v45 }
 0x90c   : > { %3482 = vmatprep.subr.bf16.mxu1 %v3886_v46  ;;  %3504 = vmatprep.subr.bf16.mxu0 %v3887_v47 }
 0x90f   : > { %3483 = vmatpush3.bf16.msra.mxu1 %v3888_v48  ;;  %3505 = vmatpush3.bf16.msra.mxu0 %v3889_v49 }
 0x910   : > { %3484 = vmatprep.subr.bf16.mxu1 %v3890_v50  ;;  %3506 = vmatprep.subr.bf16.mxu0 %v3891_v51 }
 0x913   : > { %3485 = vmatpush3.bf16.msra.mxu1 %v3892_v53  ;;  %3507 = vmatpush3.bf16.msra.mxu0 %v3893_v54 }
 0x9c9   : > { %v2679_v60 = vpop.f32.mrb[28].mxu1  ;;  %v2720_v61 = vpop.f32.mrb[16].mxu0 }
 0x9ca   : > { %v2680_v63 = vadd.f32 %v2679_v60, %v2468_v23  ;;  %v2721_v0 = vadd.f32 %v2720_v61, %v2476_v57  ;;  %v2681_v62 = vpop.f32.mrb[29].mxu1  ;;  %v2722_v1 = vpop.f32.mrb[17].mxu0 }
 0x9cb   : > { %v2682_v2 = vadd.f32 %v2681_v62, %v2472_v58  ;;  %v2723_v5 = vadd.f32 %v2722_v1, %v2480_v59  ;;  %v2683_v7 = vpop.f32.mrb[30].mxu1  ;;  %v2724_v10 = vpop.f32.mrb[18].mxu0 }
 0x9cc   : > { %v3393_v11 = vmul.f32 -1.702, %v2680_v63  ;;  %v3395_v12 = vmul.f32 -1.702, %v2721_v0  ;;  %v2684_v15 = vpop.f32.mrb[31].mxu1  ;;  %v2725_v16 = vpop.f32.mrb[19].mxu0 }
 0x9cd   : > { %v3394_v4 = vmul.f32 -1.702, %v2682_v2  ;;  %v3396_v17 = vmul.f32 -1.702, %v2723_v5 }
 0x9ce   : > { %v2735_v6 = vmul.f32 1.442695, %v3393_v11  ;;  %v2739_v3 = vmul.f32 1.442695, %v3395_v12 }
 0x9cf   : > { %v2737_v20 = vmul.f32 1.442695, %v3394_v4  ;;  %v2741_v18 = vmul.f32 1.442695, %v3396_v17 }
 0x9d0   : > { %3918 = vpow2.f32 %v2735_v6 }
 0x9d1   : > { %3920 = vpow2.f32 %v2739_v3 }
 0x9d2   : > { %3922 = vpow2.f32 %v2737_v20 }
 0x9d3   : > { %3924 = vpow2.f32 %v2741_v18 }
 0x9da   : > { %v3919_v21 = vpop.eup %3918 }
 0x9db   : > { %v3921_v24 = vpop.eup %3920  ;;  %v2743_v25 = vadd.f32 1.0, %v3919_v21 }
 0x9dc   : > { %v3923_v26 = vpop.eup %3922  ;;  %v2745_v33 = vadd.f32 1.0, %v3921_v24 }
 0x9dd   : > { %v3925_v27 = vpop.eup %3924  ;;  %3926 = vrcp.f32 %v2743_v25  ;;  %v2744_v28 = vadd.f32 1.0, %v3923_v26 }
 0x9de   : > { %3928 = vrcp.f32 %v2745_v33  ;;  %v2746_v29 = vadd.f32 1.0, %v3925_v27 }
 0x9df   : > { %3930 = vrcp.f32 %v2744_v28 }
 0x9e0   : > { %3932 = vrcp.f32 %v2746_v29 }
 0x9e7   : > { %v3927_v30 = vpop.eup %3926 }
 0x9e8   : > { %v3929_v40 = vpop.eup %3928  ;;  %v2755_v19 = vmul.f32 %v3927_v30, %v2680_v63 }
 0x9e9   : > { %v3931_v31 = vpop.eup %3930  ;;  %v2757_v35 = vmul.f32 %v3929_v40, %v2721_v0 }
 0x9ea   : > { %v3933_v34 = vpop.eup %3932  ;;  %v2756_v36 = vmul.f32 %v3931_v31, %v2682_v2  ;;  %v2759_v13 = vpack.c.bf16 %v2755_v19, %v2755_v19 }
 0x9eb   : > { %v2758_v37 = vmul.f32 %v3933_v34, %v2723_v5  ;;  %v2761_v14 = vpack.c.bf16 %v2757_v35, %v2757_v35 }
 0x9ec   : > { %v2760_v8 = vpack.c.bf16 %v2756_v36, %v2756_v36 }
 0x9ed   : > { %v2762_v22 = vpack.c.bf16 %v2758_v37, %v2758_v37 }
 0x9ee   : > { %3058 = vmatprep.mubr.bf16.mxu1 %v2760_v8 }
 0x9ef   : > { %3098 = vmatprep.mubr.bf16.mxu0 %v2762_v22  ;;  %3059 = vmatmul.mubr.bf16.vlgmr.msra.gmra.mrb[32].mxu1 %v2759_v13 }
 0x9f0   : > { %3099 = vmatmul.mubr.bf16.vlgmr.msra.gmra.mrb[20].mxu0 %v2761_v14 }
 0xac2   : > { %v3486_v38 = vpop.f32.mrb[32].mxu1 }
 0xac3   : > { %v3508_v39 = vpop.f32.mrb[20].mxu0  ;;  %v3487_v32 = vpop.f32.mrb[33].mxu1 }
 0xac4   : > { %v3488_v42 = vadd.f32 %v3487_v32, %v3486_v38  ;;  %v3509_v43 = vpop.f32.mrb[21].mxu0  ;;  %v3489_v44 = vpop.f32.mrb[34].mxu1 }
 0xac5   : > { %v3510_v45 = vadd.f32 %v3509_v43, %v3508_v39  ;;  %v3511_v46 = vpop.f32.mrb[22].mxu0  ;;  %v3490_v47 = vpop.f32.mrb[35].mxu1 }
 0xac6   : > { %v3061_v48 = vadd.f32 %v3488_v42, %v3397_v41  ;;  %v3512_v49 = vpop.f32.mrb[23].mxu0 }
 0xac8   : > { %v3101_v50 = vadd.f32 %v3510_v45, %v3061_v48 }
 0xaca   : > { %v3106_v51 = vadd.f32 %v3101_v50, %v5046_v9 }
 0xacc   : > { %3107 = vst [vmem:[%s666_s12] sm:$0xff] %v3106_v51 }
 0xacd   : > { %4148 = shalt.err (!%p4145_p8)
}
 0xace   : > { %s4149_s1 = scalar_lea.hbm %s5076_s21, 128  ;;  %s4153_s15 = scalar_lea.hbm %s5240_s11, 512 }
 0xacf   : > { %p4150_p4 = scmp.ne.s32.totalorder %s5076_s21, %s4149_s1  ;;  %p4154_p5 = scmp.lt.u32.totalorder %s5076_s21, %s5240_s11 }
 0xad0   : > { %p4155_p12 = scmp.lt.u32.totalorder %s4153_s15, %s4149_s1  ;;  %p4157_p6 = scmp.lt.u32.totalorder %s4149_s1, %s5076_s21 }
 0xad1   : > { %p4151_p9 = pnand %p4150_p4, %p5241_p11 }
 0xad2   : > { %p4156_p3 = por %p4155_p12, %p4154_p5 }
 0xad3   : > { %p4152_p0 = pneg %p4151_p9 }
 0xad4   : > { %p4158_p10 = por %p4157_p6, %p4156_p3 }
 0xad6   : > { %p4159_p1 = pnand %p4158_p10, %p4152_p0 }
 0xad8   : > { %4162 = shalt.err (!%p4159_p1)
}
 0xad9   : > { %3626 = dma.vmem_to_hbm [thread:$0]  (%p5241_p11), %s5078_s2, 128, %s5076_s21, %s3109_s16  }
 0xada PF: > { %p3666_p2 = scmp.ge.s32.totalorder %s4273_s0, 2  ;;  %s3136_s12 = sand.u32 1, %s4245_s24  }
 0xadb   : > { %p5242_p7 = scmp.ne.s32.totalorder %s5211_s20, 0  ;;  %s3137_s27 = scalar_lea.sflag [#allocation4], %s3136_s12 }
 0xadd   : > { %p3652_p13 = pnand %p3666_p2, %p5242_p7 }
 0xadf   : > { %4228 = dma.done.wait (!%p3652_p13), %s3137_s27, 128  }
 0xae0   : > { %4230 = vsyncadd (!%p3652_p13), %s3137_s27, 4294967168  ;;  %s37_s0 = sadd.s32 1, %s4273_s0   ;;  %s5243_s13 = sld [smem:[#allocation24_spill]] }
 0xae1   : > { %p34_p8 = scmp.ge.s32.totalorder %s37_s0, 6   ;;  %s5244_s21 = smov %s4237_s22 }
 0xae2   : > { %s5245_s22 = smov %s4241_s23  ;;  %s5246_s23 = smov %s4620_s18 }
 0xae3   : > { %s5247_s24 = smov %s4249_s25  ;;  %s5248_s25 = smov %s4253_s26 }
 0xae4   : > { %s5249_s26 = smov %s4623_s28  ;;  %s5250_s27 = smov %s4265_s29 }
 0xae5   : > { %s5251_s28 = smov %s4269_s30  ;;  %s5252_s29 = smov %s5255_s19 }
 0xae6   : > { %s5253_s30 = smov %s5243_s13  ;;  %36 = sbr.rel (!%p34_p8) target bundleno = 31 (0x1f), region = 162 }
 0xaed   :  { %3142 = vsyncpa [#allocation3], 1 }
 0xaee   :  { %3144 = vsyncpa [#allocation3 + $0x1], 1 }
 0xaef   :  { %3145 = vsyncpa [#allocation6], 1 }
 0xaf0   :  { %3147 = vsyncpa [#allocation6 + $0x1], 1 }
 0xaf1   :  { %3148 = vsyncpa [#allocation9], 1 }
 0xaf2   :  { %3149 = vsyncpa [#allocation12], 1 }
 0xaf3   :  { %3150 = vsyncpa [#allocation4], 1 }
 0xaf4   :  { %3152 = vsyncpa [#allocation4 + $0x1], 1 }

</bundles_post_ra>
